<compile_context>
chip_gen: v7x
topology: tpu7x:2x2x1
jax: 0.10.0
libtpu: 0.0.40
codegen_flags: <defaults>
</compile_context>

<pallas_src>
import functools

import jax
import jax.numpy as jnp
from jax.experimental import pallas as pl
from jax.experimental.pallas import tpu as pltpu

_IN_DIM = 1024
_HIDDEN = (512, 256, 128)
_OUT_DIM = 2
_PAD_OUT = 128  # lane-dense padded width of the final layer output


def _round_up(n, m):
    return ((n + m - 1) // m) * m


def _mlp_kernel(x_ref,
                w1_ref, b1_ref,
                w2_ref, b2_ref,
                w3_ref, b3_ref,
                w4_ref, b4_ref,
                o_ref, *, compute_dtype):
    """Whole MLP fused; one invocation per batch tile. Weights VMEM-resident."""
    x = x_ref[...]
    if x.dtype != compute_dtype:          # no-op when the producer feeds bf16
        x = x.astype(compute_dtype)
    # bf16 MXU operands, f32 accumulation; biases (f32) added post-accumulate.
    h = jnp.dot(x, w1_ref[...], preferred_element_type=jnp.float32) + b1_ref[...]
    h = jnp.maximum(h, 0.0).astype(compute_dtype)
    h = jnp.dot(h, w2_ref[...], preferred_element_type=jnp.float32) + b2_ref[...]
    h = jnp.maximum(h, 0.0).astype(compute_dtype)
    h = jnp.dot(h, w3_ref[...], preferred_element_type=jnp.float32) + b3_ref[...]
    h = jnp.maximum(h, 0.0).astype(compute_dtype)
    out = jnp.dot(h, w4_ref[...], preferred_element_type=jnp.float32) + b4_ref[...]
    o_ref[...] = out.astype(o_ref.dtype)


def prepare_params(params, compute_dtype=jnp.bfloat16):
    """One-time weight prep — call OUTSIDE the per-step hot path / jit.

    Casts weights to the MXU compute dtype and zero-pads layer 4 to a
    lane-dense 128-wide output.  Biases stay f32 (added after the f32
    accumulation); b4 is zero-padded in lockstep with w4 so the padded logit
    columns stay exactly zero.
    """
    out_dim = params["w4"].shape[1]
    pad = _PAD_OUT - out_dim
    return {
        "w1": params["w1"].astype(compute_dtype),
        "w2": params["w2"].astype(compute_dtype),
        "w3": params["w3"].astype(compute_dtype),
        "w4": jnp.pad(params["w4"].astype(compute_dtype), ((0, 0), (0, pad))),
        "b1": params["b1"].astype(jnp.float32),
        "b2": params["b2"].astype(jnp.float32),
        "b3": params["b3"].astype(jnp.float32),
        "b4": jnp.pad(params["b4"].astype(jnp.float32), ((0, 0), (0, pad))),
    }


def classifier_forward(x, prepped, *, batch_tile=1024,
                       compute_dtype=jnp.bfloat16, out_dtype=jnp.bfloat16):
    """x: (B, 1024), ideally bf16 straight from the producer (f32 also works).
    prepped: output of prepare_params()."""
    B, in_dim = x.shape

    w1, b1 = prepped["w1"], prepped["b1"]
    w2, b2 = prepped["w2"], prepped["b2"]
    w3, b3 = prepped["w3"], prepped["b3"]
    w4, b4 = prepped["w4"], prepped["b4"]

    # Batch tile: as large as practical (amortizes the ~0.35us per-grid-step
    # overhead), but (a) no bigger than the rounded-up batch, (b) capped so
    # the grid has >= 2 steps for moderate/large B — with
    # dimension_semantics=("parallel",) those steps shard across v7x's two
    # TensorCores — and (c) a multiple of 8.  At bt=1024 with bf16 x the
    # per-step VMEM footprint is ~10-12 MiB, inside the default scoped VMEM
    # on every generation, so no vmem_limit_bytes override is needed.
    bt = min(batch_tile, _round_up(B, 8))
    bt = min(bt, _round_up(pl.cdiv(B, 2), 8))
    bt = max(8, (bt // 8) * 8)
    grid = (pl.cdiv(B, bt),)  # partial tail tile handled by Pallas masking

    def resident_spec(arr):
        # Grid-invariant block: whole array stays resident in VMEM across the
        # grid.  Single-buffered: it is DMA'd once, no second buffer needed.
        return pl.BlockSpec(arr.shape, lambda i: (0, 0),
                            pipeline_mode=pl.Buffered(1))

    flops = 2 * B * (in_dim * _HIDDEN[0]
                     + _HIDDEN[0] * _HIDDEN[1]
                     + _HIDDEN[1] * _HIDDEN[2]
                     + _HIDDEN[2] * _PAD_OUT)
    weight_bytes = sum(int(a.size) * a.dtype.itemsize
                       for a in (w1, b1, w2, b2, w3, b3, w4, b4))
    bytes_accessed = (int(x.size) * x.dtype.itemsize
                      + weight_bytes
                      + B * _PAD_OUT * jnp.dtype(out_dtype).itemsize)

    kernel = functools.partial(_mlp_kernel, compute_dtype=compute_dtype)

    out = pl.pallas_call(
        kernel,
        out_shape=jax.ShapeDtypeStruct((B, _PAD_OUT), out_dtype),
        grid_spec=pltpu.PrefetchScalarGridSpec(
            num_scalar_prefetch=0,
            grid=grid,
            in_specs=[
                pl.BlockSpec((bt, in_dim), lambda i: (i, 0)),  # x batch tile
                resident_spec(w1), resident_spec(b1),
                resident_spec(w2), resident_spec(b2),
                resident_spec(w3), resident_spec(b3),
                resident_spec(w4), resident_spec(b4),
            ],
            out_specs=pl.BlockSpec((bt, _PAD_OUT), lambda i: (i, 0)),
        ),
        compiler_params=pltpu.CompilerParams(
            dimension_semantics=("parallel",)),
        cost_estimate=pl.CostEstimate(flops=flops,
                                      transcendentals=0,
                                      bytes_accessed=bytes_accessed),
    )(x, w1, b1, w2, b2, w3, b3, w4, b4)

    # Drop the zero-padded logit columns.  (Downstream code able to consume the
    # padded (B,128) slab directly should do so and skip this extra pass.)
    return out[:, :_OUT_DIM]


def init_params(key, in_dim=_IN_DIM):
    """Deterministic init mimicking nn.Linear (uniform +-1/sqrt(fan_in)).
    Weights stored as (in_features, out_features); biases as (1, out)."""
    dims = [in_dim, *_HIDDEN, _OUT_DIM]
    params = {}
    for li in range(4):
        fan_in, fan_out = dims[li], dims[li + 1]
        key, kw, kb = jax.random.split(key, 3)
        bound = 1.0 / jnp.sqrt(fan_in)
        params[f"w{li+1}"] = jax.random.uniform(
            kw, (fan_in, fan_out), jnp.float32, -bound, bound)
        params[f"b{li+1}"] = jax.random.uniform(
            kb, (1, fan_out), jnp.float32, -bound, bound)
    return params


def reference_forward_f32(x, p):
    h = jnp.maximum(x @ p["w1"] + p["b1"], 0.0)
    h = jnp.maximum(h @ p["w2"] + p["b2"], 0.0)
    h = jnp.maximum(h @ p["w3"] + p["b3"], 0.0)
    return h @ p["w4"] + p["b4"]


def reference_forward_mixed(x, p):
    """Mirrors the kernel's precision: bf16 operands, f32 accumulation."""
    def lin(a, w, b):
        return jnp.dot(a.astype(jnp.bfloat16), w.astype(jnp.bfloat16),
                       preferred_element_type=jnp.float32) + b
    h = jnp.maximum(lin(x, p["w1"], p["b1"]), 0.0).astype(jnp.bfloat16)
    h = jnp.maximum(lin(h, p["w2"], p["b2"]), 0.0).astype(jnp.bfloat16)
    h = jnp.maximum(lin(h, p["w3"], p["b3"]), 0.0).astype(jnp.bfloat16)
    return lin(h, p["w4"], p["b4"])


if __name__ == "__main__":
    key = jax.random.PRNGKey(0)
    kx, kp = jax.random.split(key)

    batch = 8
    x_f32 = jax.random.normal(kx, (batch, _IN_DIM), jnp.float32)
    params = init_params(kp, in_dim=_IN_DIM)

    # One-time weight prep (outside the hot path).
    prepped = prepare_params(params)

    # In a real pipeline the upstream op should emit bf16 directly (avoids an
    # extra HBM pass); for this standalone test we cast once here.
    x_bf16 = x_f32.astype(jnp.bfloat16)

    logits = classifier_forward(x_bf16, prepped)
    logits = jax.block_until_ready(logits)
    assert logits.shape == (batch, _OUT_DIM), logits.shape

    logits_f32 = logits.astype(jnp.float32)
    ref_mixed = reference_forward_mixed(x_bf16.astype(jnp.float32), params)
    ref_f32 = reference_forward_f32(x_f32, params)
    err_mixed = float(jnp.max(jnp.abs(logits_f32 - ref_mixed)))
    err_f32 = float(jnp.max(jnp.abs(logits_f32 - ref_f32)))
    assert jnp.allclose(logits_f32, ref_mixed, atol=3e-2, rtol=3e-2), err_mixed
    assert jnp.allclose(logits_f32, ref_f32, atol=1e-1, rtol=1e-1), err_f32

    # TODO(synk): nn.Dropout(0.1) layers exist in __init__ but are never used in
    # forward(), so they are intentionally not implemented.

    print("KERNEL_OK")
</pallas_src>

<mosaic_0001>
module attributes {stable_mosaic.version = 11 : i64} {
  func.func @_mlp_kernel(%arg0: i32, %arg1: memref<8x1024xbf16, #tpu.memory_space<vmem>>, %arg2: memref<1024x512xbf16, #tpu.memory_space<vmem>>, %arg3: memref<1x512xf32, #tpu.memory_space<vmem>>, %arg4: memref<512x256xbf16, #tpu.memory_space<vmem>>, %arg5: memref<1x256xf32, #tpu.memory_space<vmem>>, %arg6: memref<256x128xbf16, #tpu.memory_space<vmem>>, %arg7: memref<1x128xf32, #tpu.memory_space<vmem>>, %arg8: memref<128x128xbf16, #tpu.memory_space<vmem>>, %arg9: memref<1x128xf32, #tpu.memory_space<vmem>>, %arg10: memref<8x128xbf16, #tpu.memory_space<vmem>>) attributes {dimension_semantics = [#tpu.dimension_semantics<parallel>], iteration_bounds = array<i64: 1>, scalar_prefetch = 0 : i64, scratch_operands = 0 : i64, tpu.core_type = #tpu.core_type<tc>, window_params = [{transform_indices = @transform_0, window_bounds = array<i64: 8, 1024>}, {pipeline_mode = #tpu.pipeline_mode<synchronous>, transform_indices = @transform_1, window_bounds = array<i64: 1024, 512>}, {pipeline_mode = #tpu.pipeline_mode<synchronous>, transform_indices = @transform_2, window_bounds = array<i64: 1, 512>}, {pipeline_mode = #tpu.pipeline_mode<synchronous>, transform_indices = @transform_3, window_bounds = array<i64: 512, 256>}, {pipeline_mode = #tpu.pipeline_mode<synchronous>, transform_indices = @transform_4, window_bounds = array<i64: 1, 256>}, {pipeline_mode = #tpu.pipeline_mode<synchronous>, transform_indices = @transform_5, window_bounds = array<i64: 256, 128>}, {pipeline_mode = #tpu.pipeline_mode<synchronous>, transform_indices = @transform_6, window_bounds = array<i64: 1, 128>}, {pipeline_mode = #tpu.pipeline_mode<synchronous>, transform_indices = @transform_7, window_bounds = array<i64: 128, 128>}, {pipeline_mode = #tpu.pipeline_mode<synchronous>, transform_indices = @transform_8, window_bounds = array<i64: 1, 128>}, {transform_indices = @transform_9, window_bounds = array<i64: 8, 128>}]} {
    %c0 = arith.constant 0 : index
    %c0_0 = arith.constant 0 : index
    %0 = vector.load %arg1[%c0, %c0_0] : memref<8x1024xbf16, #tpu.memory_space<vmem>>, vector<8x1024xbf16>
    %c0_1 = arith.constant 0 : index
    %c0_2 = arith.constant 0 : index
    %1 = vector.load %arg2[%c0_1, %c0_2] : memref<1024x512xbf16, #tpu.memory_space<vmem>>, vector<1024x512xbf16>
    %cst = arith.constant dense<0.000000e+00> : vector<8x512xf32>
    %2 = tpu.matmul %0, %1, %cst {dimension_numbers = #tpu.dot_dimension_numbers<[1], [0], [0], [1], [0, 0, 1, 1], [], []>} : vector<8x1024xbf16>, vector<1024x512xbf16>, vector<8x512xf32> -> vector<8x512xf32>
    %c0_3 = arith.constant 0 : index
    %c0_4 = arith.constant 0 : index
    %3 = vector.load %arg3[%c0_3, %c0_4] : memref<1x512xf32, #tpu.memory_space<vmem>>, vector<1x512xf32>
    %4 = vector.broadcast %3 : vector<1x512xf32> to vector<8x512xf32>
    %5 = arith.addf %2, %4 : vector<8x512xf32>
    %cst_5 = arith.constant 0.000000e+00 : f32
    %6 = vector.broadcast %cst_5 : f32 to vector<8x512xf32>
    %7 = arith.maximumf %5, %6 : vector<8x512xf32>
    %8 = arith.truncf %7 : vector<8x512xf32> to vector<8x512xbf16>
    %c0_6 = arith.constant 0 : index
    %c0_7 = arith.constant 0 : index
    %9 = vector.load %arg4[%c0_6, %c0_7] : memref<512x256xbf16, #tpu.memory_space<vmem>>, vector<512x256xbf16>
    %cst_8 = arith.constant dense<0.000000e+00> : vector<8x256xf32>
    %10 = tpu.matmul %8, %9, %cst_8 {dimension_numbers = #tpu.dot_dimension_numbers<[1], [0], [0], [1], [0, 0, 1, 1], [], []>} : vector<8x512xbf16>, vector<512x256xbf16>, vector<8x256xf32> -> vector<8x256xf32>
    %c0_9 = arith.constant 0 : index
    %c0_10 = arith.constant 0 : index
    %11 = vector.load %arg5[%c0_9, %c0_10] : memref<1x256xf32, #tpu.memory_space<vmem>>, vector<1x256xf32>
    %12 = vector.broadcast %11 : vector<1x256xf32> to vector<8x256xf32>
    %13 = arith.addf %10, %12 : vector<8x256xf32>
    %cst_11 = arith.constant 0.000000e+00 : f32
    %14 = vector.broadcast %cst_11 : f32 to vector<8x256xf32>
    %15 = arith.maximumf %13, %14 : vector<8x256xf32>
    %16 = arith.truncf %15 : vector<8x256xf32> to vector<8x256xbf16>
    %c0_12 = arith.constant 0 : index
    %c0_13 = arith.constant 0 : index
    %17 = vector.load %arg6[%c0_12, %c0_13] : memref<256x128xbf16, #tpu.memory_space<vmem>>, vector<256x128xbf16>
    %cst_14 = arith.constant dense<0.000000e+00> : vector<8x128xf32>
    %18 = tpu.matmul %16, %17, %cst_14 {dimension_numbers = #tpu.dot_dimension_numbers<[1], [0], [0], [1], [0, 0, 1, 1], [], []>} : vector<8x256xbf16>, vector<256x128xbf16>, vector<8x128xf32> -> vector<8x128xf32>
    %c0_15 = arith.constant 0 : index
    %c0_16 = arith.constant 0 : index
    %19 = vector.load %arg7[%c0_15, %c0_16] : memref<1x128xf32, #tpu.memory_space<vmem>>, vector<1x128xf32>
    %20 = vector.broadcast %19 : vector<1x128xf32> to vector<8x128xf32>
    %21 = arith.addf %18, %20 : vector<8x128xf32>
    %cst_17 = arith.constant 0.000000e+00 : f32
    %22 = vector.broadcast %cst_17 : f32 to vector<8x128xf32>
    %23 = arith.maximumf %21, %22 : vector<8x128xf32>
    %24 = arith.truncf %23 : vector<8x128xf32> to vector<8x128xbf16>
    %c0_18 = arith.constant 0 : index
    %c0_19 = arith.constant 0 : index
    %25 = vector.load %arg8[%c0_18, %c0_19] : memref<128x128xbf16, #tpu.memory_space<vmem>>, vector<128x128xbf16>
    %cst_20 = arith.constant dense<0.000000e+00> : vector<8x128xf32>
    %26 = tpu.matmul %24, %25, %cst_20 {dimension_numbers = #tpu.dot_dimension_numbers<[1], [0], [0], [1], [0, 0, 1, 1], [], []>} : vector<8x128xbf16>, vector<128x128xbf16>, vector<8x128xf32> -> vector<8x128xf32>
    %c0_21 = arith.constant 0 : index
    %c0_22 = arith.constant 0 : index
    %27 = vector.load %arg9[%c0_21, %c0_22] : memref<1x128xf32, #tpu.memory_space<vmem>>, vector<1x128xf32>
    %28 = vector.broadcast %27 : vector<1x128xf32> to vector<8x128xf32>
    %29 = arith.addf %26, %28 : vector<8x128xf32>
    %30 = arith.truncf %29 : vector<8x128xf32> to vector<8x128xbf16>
    %c0_23 = arith.constant 0 : index
    %c0_24 = arith.constant 0 : index
    %31 = vector.load %arg10[%c0_23, %c0_24] : memref<8x128xbf16, #tpu.memory_space<vmem>>, vector<8x128xbf16>
    tpu.vector_store %arg10[%c0_23, %c0_24], %30 {strides = array<i32>} : memref<8x128xbf16, #tpu.memory_space<vmem>>, vector<8x128xbf16>,
    return
  }
  func.func @transform_0(%arg0: i32) -> (i32, i32) {
    %c0_i32 = arith.constant 0 : i32
    %c0_i32_0 = arith.constant 0 : i32
    return %arg0, %c0_i32 : i32, i32
  }
  func.func @transform_1(%arg0: i32) -> (i32, i32) {
    %c0_i32 = arith.constant 0 : i32
    %c0_i32_0 = arith.constant 0 : i32
    %c0_i32_1 = arith.constant 0 : i32
    return %c0_i32, %c0_i32_0 : i32, i32
  }
  func.func @transform_2(%arg0: i32) -> (i32, i32) {
    %c0_i32 = arith.constant 0 : i32
    %c0_i32_0 = arith.constant 0 : i32
    %c0_i32_1 = arith.constant 0 : i32
    return %c0_i32, %c0_i32_0 : i32, i32
  }
  func.func @transform_3(%arg0: i32) -> (i32, i32) {
    %c0_i32 = arith.constant 0 : i32
    %c0_i32_0 = arith.constant 0 : i32
    %c0_i32_1 = arith.constant 0 : i32
    return %c0_i32, %c0_i32_0 : i32, i32
  }
  func.func @transform_4(%arg0: i32) -> (i32, i32) {
    %c0_i32 = arith.constant 0 : i32
    %c0_i32_0 = arith.constant 0 : i32
    %c0_i32_1 = arith.constant 0 : i32
    return %c0_i32, %c0_i32_0 : i32, i32
  }
  func.func @transform_5(%arg0: i32) -> (i32, i32) {
    %c0_i32 = arith.constant 0 : i32
    %c0_i32_0 = arith.constant 0 : i32
    %c0_i32_1 = arith.constant 0 : i32
    return %c0_i32, %c0_i32_0 : i32, i32
  }
  func.func @transform_6(%arg0: i32) -> (i32, i32) {
    %c0_i32 = arith.constant 0 : i32
    %c0_i32_0 = arith.constant 0 : i32
    %c0_i32_1 = arith.constant 0 : i32
    return %c0_i32, %c0_i32_0 : i32, i32
  }
  func.func @transform_7(%arg0: i32) -> (i32, i32) {
    %c0_i32 = arith.constant 0 : i32
    %c0_i32_0 = arith.constant 0 : i32
    %c0_i32_1 = arith.constant 0 : i32
    return %c0_i32, %c0_i32_0 : i32, i32
  }
  func.func @transform_8(%arg0: i32) -> (i32, i32) {
    %c0_i32 = arith.constant 0 : i32
    %c0_i32_0 = arith.constant 0 : i32
    %c0_i32_1 = arith.constant 0 : i32
    return %c0_i32, %c0_i32_0 : i32, i32
  }
  func.func @transform_9(%arg0: i32) -> (i32, i32) {
    %c0_i32 = arith.constant 0 : i32
    %c0_i32_0 = arith.constant 0 : i32
    return %arg0, %c0_i32 : i32, i32
  }
}

</mosaic_0001>

<bundles_post_ra>
// kernel: tpu_custom_call.1
= control target key start
LH: loop header
LB: loop body
LE: loop exit
PB: predicated region body
PF: predicated region fallthrough
CT: control target
= control target key end

     0   :  { %14 = vsyncpa [#allocation3], 0  ;;  %s4122_s0 = inlined_call_operand.hbm [shape: bf16[8,1024], index: 0, kind: input, shape index: {}]   ;;  %s4123_s1 = inlined_call_operand.hbm [shape: bf16[1024,512], index: 1, kind: input, shape index: {}]   ;;  %s4124_s2 = inlined_call_operand.vmem [shape: f32[1,512], index: 2, kind: input, shape index: {}]   ;;  %s4125_s3 = inlined_call_operand.hbm [shape: bf16[512,256], index: 3, kind: input, shape index: {}]   ;;  %s4126_s4 = inlined_call_operand.vmem [shape: f32[1,256], index: 4, kind: input, shape index: {}]   ;;  %s4127_s5 = inlined_call_operand.hbm [shape: bf16[256,128], index: 5, kind: input, shape index: {}]   ;;  %s4128_s6 = inlined_call_operand.vmem [shape: f32[1,128], index: 6, kind: input, shape index: {}]   ;;  %s4129_s7 = inlined_call_operand.hbm [shape: bf16[128,128], index: 7, kind: input, shape index: {}]   ;;  %s4130_s8 = inlined_call_operand.vmem [shape: f32[1,128], index: 8, kind: input, shape index: {}]   ;;  %s4131_s9 = inlined_call_operand.hbm [shape: bf16[8,128], index: 9, kind: output, shape index: {}]  }
   0x1   :  { %15 = vsyncpa [#allocation6], 0 }
   0x2   :  { %16 = vsyncpa [#allocation9], 0 }
   0x3   :  { %17 = vsyncpa [#allocation4], 0  ;;  %s3920_s30 = smov [#allocation5]   ;;  %s3780_s13 = scalar_lea.hbm %s4123_s1, 32768 }
   0x4   :  { %s33_s10 = sshll.u32 %s3920_s30, 4  ;;  %p3781_p0 = scmp.ne.s32.totalorder %s4123_s1, %s3780_s13  ;;  %s34_s10 = int_to_ptr.vmem [resolvable:$true] %s33_s10 }
   0x5   :  { %p3784_p1 = scmp.lt.u32.totalorder %s3780_s13, %s4123_s1 }
   0x7   :  { %p3786_p2 = pnand %p3784_p1, %p3781_p0 }
   0x9   :  { %3789 = shalt.err (!%p3786_p2)
}
   0xa   :  { %s3790_s18 = scalar_lea.vmem %s34_s10, 32768  ;;  %p3795_p4 = scmp.lt.s32.totalorder %s34_s10, %s34_s10 }
   0xb   :  { %p3791_p3 = scmp.ne.s32.totalorder %s34_s10, %s3790_s18  ;;  %p3796_p5 = scmp.lt.s32.totalorder %s3790_s18, %s3790_s18 }
   0xd   :  { %p3797_p6 = por %p3796_p5, %p3795_p4 }
   0xf   :  { %p3798_p7 = pnand %p3797_p6, %p3791_p3 }
  0x11   :  { %3801 = shalt.err (!%p3798_p7)
}
  0x12   :  { %s3921_s19 = smov 256   ;;  %s3922_s20 = smov 16  }
  0x13   :  { %39 = dma.hbm_to_vmem [thread:$0]  %s4123_s1, 32768, %s34_s10, [#allocation6], %s3921_s19, %s3921_s19, %s3922_s20  }
  0x14   :  { %s3923_s23 = smov [#allocation8]   ;;  %s3802_s27 = scalar_lea.hbm %s4127_s5, 2048 }
  0x15   :  { %s61_s24 = sshll.u32 %s3923_s23, 4  ;;  %p3803_p8 = scmp.ne.s32.totalorder %s4127_s5, %s3802_s27  ;;  %s62_s24 = int_to_ptr.vmem [resolvable:$true] %s61_s24 }
  0x16   :  { %p3806_p9 = scmp.lt.u32.totalorder %s3802_s27, %s4127_s5 }
  0x18   :  { %p3808_p10 = pnand %p3806_p9, %p3803_p8 }
  0x1a   :  { %3811 = shalt.err (!%p3808_p10)
}
  0x1b   :  { %s3812_s12 = scalar_lea.vmem %s62_s24, 2048  ;;  %p3817_p12 = scmp.lt.s32.totalorder %s62_s24, %s62_s24 }
  0x1c   :  { %p3813_p11 = scmp.ne.s32.totalorder %s62_s24, %s3812_s12  ;;  %p3818_p13 = scmp.lt.s32.totalorder %s3812_s12, %s3812_s12 }
  0x1e   :  { %p3819_p0 = por %p3818_p13, %p3817_p12 }
  0x20   :  { %p3820_p1 = pnand %p3819_p0, %p3813_p11 }
  0x22   :  { %3823 = shalt.err (!%p3820_p1)
}
  0x23   :  { %s3924_s1 = smov 64   ;;  %s3925_s10 = smov 4  }
  0x24   :  { %67 = dma.hbm_to_vmem [thread:$0]  %s4127_s5, 2048, %s62_s24, [#allocation9], %s3924_s1, %s3924_s1, %s3925_s10  }
  0x25   :  { %s3926_s15 = smov [#allocation2]   ;;  %s3927_s17 = smov [#allocation7]  }
  0x26   :  { %s24_s16 = sshll.u32 %s3926_s15, 4  ;;  %s47_s18 = sshll.u32 %s3927_s17, 4  ;;  %s25_s16 = int_to_ptr.vmem [resolvable:$true] %s24_s16  ;;  %s4011_s18 = int_to_ptr.vmem [resolvable:$true] %s47_s18 }
  0x27   :  { %s3824_s21 = scalar_lea.hbm %s4122_s0, 512 }
  0x28   :  { %p3825_p2 = scmp.ne.s32.totalorder %s4122_s0, %s3824_s21  ;;  %p3828_p3 = scmp.lt.u32.totalorder %s3824_s21, %s4122_s0 }
  0x2a   :  { %p3830_p4 = pnand %p3828_p3, %p3825_p2 }
  0x2c   :  { %3833 = shalt.err (!%p3830_p4)
}
  0x2d   :  { %s3834_s5 = scalar_lea.vmem %s25_s16, 512  ;;  %p3839_p6 = scmp.lt.s32.totalorder %s25_s16, %s25_s16 }
  0x2e   :  { %p3835_p5 = scmp.ne.s32.totalorder %s25_s16, %s3834_s5  ;;  %p3840_p7 = scmp.lt.s32.totalorder %s3834_s5, %s3834_s5 }
  0x30   :  { %p3841_p8 = por %p3840_p7, %p3839_p6 }
  0x32   :  { %p3842_p9 = pnand %p3841_p8, %p3835_p5 }
  0x34   :  { %3845 = shalt.err (!%p3842_p9)
}
  0x35   :  { %27 = dma.hbm_to_vmem [thread:$0]  %s4122_s0, 512, %s25_s16, [#allocation3]  }
  0x36   :  { %s3846_s30 = scalar_lea.hbm %s4125_s3, 8192 }
  0x37   :  { %p3847_p10 = scmp.ne.s32.totalorder %s4125_s3, %s3846_s30  ;;  %p3850_p11 = scmp.lt.u32.totalorder %s3846_s30, %s4125_s3 }
  0x39   :  { %p3852_p12 = pnand %p3850_p11, %p3847_p10 }
  0x3b   :  { %3855 = shalt.err (!%p3852_p12)
}
  0x3c   :  { %s3856_s15 = scalar_lea.vmem %s4011_s18, 8192  ;;  %p3861_p0 = scmp.lt.s32.totalorder %s4011_s18, %s4011_s18 }
  0x3d   :  { %p3857_p13 = scmp.ne.s32.totalorder %s4011_s18, %s3856_s15  ;;  %p3862_p1 = scmp.lt.s32.totalorder %s3856_s15, %s3856_s15 }
  0x3f   :  { %p3863_p2 = por %p3862_p1, %p3861_p0 }
  0x41   :  { %p3864_p3 = pnand %p3863_p2, %p3857_p13 }
  0x43   :  { %3867 = shalt.err (!%p3864_p3)
}
  0x44   :  { %s3928_s0 = smov 128   ;;  %s3929_s16 = smov 8  }
  0x45   :  { %53 = dma.hbm_to_vmem [thread:$0]  %s4125_s3, 8192, %s4011_s18, [#allocation6], %s3928_s0, %s3928_s0, %s3929_s16  }
  0x46   :  { %s3930_s20 = smov [#allocation10]   ;;  %s3868_s25 = scalar_lea.hbm %s4129_s7, 1024 }
  0x47   :  { %s75_s21 = sshll.u32 %s3930_s20, 4  ;;  %p3869_p4 = scmp.ne.s32.totalorder %s4129_s7, %s3868_s25  ;;  %s76_s21 = int_to_ptr.vmem [resolvable:$true] %s75_s21 }
  0x48   :  { %p3872_p5 = scmp.lt.u32.totalorder %s3868_s25, %s4129_s7 }
  0x4a   :  { %p3874_p6 = pnand %p3872_p5, %p3869_p4 }
  0x4c   :  { %3877 = shalt.err (!%p3874_p6)
}
  0x4d   :  { %s3878_s28 = scalar_lea.vmem %s76_s21, 1024  ;;  %p3883_p8 = scmp.lt.s32.totalorder %s76_s21, %s76_s21 }
  0x4e   :  { %p3879_p7 = scmp.ne.s32.totalorder %s76_s21, %s3878_s28  ;;  %p3884_p9 = scmp.lt.s32.totalorder %s3878_s28, %s3878_s28 }
  0x50   :  { %p3885_p10 = por %p3884_p9, %p3883_p8 }
  0x52   :  { %p3886_p11 = pnand %p3885_p10, %p3879_p7 }
  0x54   :  { %3889 = shalt.err (!%p3886_p11)
}
  0x55   :  { %81 = dma.hbm_to_vmem [thread:$0]  %s4129_s7, 1024, %s76_s21, [#allocation9], %s3924_s1, %s3924_s1, %s3925_s10  }
  0x56   :  { %3912 = dma.done.wait [#allocation3], 512  }
  0x57   :  { %3913 = vsyncadd [#allocation3], 4294966784 }
  0x58   :  { %3914 = dma.done.wait [#allocation6], 40960  }
  0x59   :  { %3915 = vsyncadd [#allocation6], 4294926336 }
  0x5a   :  { %3916 = dma.done.wait [#allocation9], 3072  }
  0x5b   :  { %3917 = vsyncadd [#allocation9], 4294964224  ;;  %v3268_v0 = vld [vmem:[#allocation5 + $0x4] ss:$16 sps:$4 sm:$0xff]   ;;  %v3270_v1 = vld [vmem:[#allocation5 + $0xc] ss:$16 sps:$4 sm:$0xff]  }
  0x5c   :  { %1690 = vmatprep.subr.bf16.mxu0 %v3268_v0  ;;  %v3272_v2 = vld [vmem:[#allocation5] ss:$16 sps:$4 sm:$0xff]   ;;  %v3273_v3 = vld [vmem:[#allocation5 + $0x8] ss:$16 sps:$4 sm:$0xff]   ;;  %1854 = vmatprep.subr.bf16.mxu1 %v3270_v1  ;;  %v3274_v4 = vld [vmem:[#allocation5 + $0x24] ss:$16 sps:$4 sm:$0xff]  }
  0x5d   :  { %1691 = vmatpush1.bf16.msra.mxu0 %v3272_v2  ;;  %1855 = vmatpush1.bf16.msra.mxu1 %v3273_v3  ;;  %v3276_v5 = vld [vmem:[#allocation5 + $0x2c] ss:$16 sps:$4 sm:$0xff]   ;;  %v3278_v6 = vld [vmem:[#allocation5 + $0x20] ss:$16 sps:$4 sm:$0xff]   ;;  %v3279_v7 = vld [vmem:[#allocation5 + $0x28] ss:$16 sps:$4 sm:$0xff]  }
  0x5e   :  { %1692 = vmatprep.subr.bf16.mxu0 %v3274_v4  ;;  %1856 = vmatprep.subr.bf16.mxu1 %v3276_v5  ;;  %v3280_v8 = vld [vmem:[#allocation5 + $0x44] ss:$16 sps:$4 sm:$0xff]   ;;  %v3282_v9 = vld [vmem:[#allocation5 + $0x4c] ss:$16 sps:$4 sm:$0xff]   ;;  %v3284_v10 = vld [vmem:[#allocation5 + $0x40] ss:$16 sps:$4 sm:$0xff]  }
  0x5f   :  { %v3285_v11 = vld [vmem:[#allocation5 + $0x48] ss:$16 sps:$4 sm:$0xff]   ;;  %v3286_v12 = vld [vmem:[#allocation5 + $0x64] ss:$16 sps:$4 sm:$0xff]   ;;  %v3288_v13 = vld [vmem:[#allocation5 + $0x6c] ss:$16 sps:$4 sm:$0xff]  }
  0x60   :  { %v3290_v14 = vld [vmem:[#allocation5 + $0x60] ss:$16 sps:$4 sm:$0xff]   ;;  %v3291_v15 = vld [vmem:[#allocation5 + $0x68] ss:$16 sps:$4 sm:$0xff]   ;;  %v3292_v16 = vld [vmem:[#allocation5 + $0x84] ss:$16 sps:$4 sm:$0xff]  }
  0x61   :  { %1693 = vmatpush1.bf16.msra.mxu0 %v3278_v6  ;;  %1857 = vmatpush1.bf16.msra.mxu1 %v3279_v7  ;;  %v3294_v17 = vld [vmem:[#allocation5 + $0x8c] ss:$16 sps:$4 sm:$0xff]   ;;  %v3296_v18 = vld [vmem:[#allocation5 + $0x80] ss:$16 sps:$4 sm:$0xff]   ;;  %v3297_v19 = vld [vmem:[#allocation5 + $0x88] ss:$16 sps:$4 sm:$0xff]  }
  0x62   :  { %1694 = vmatprep.subr.bf16.mxu0 %v3280_v8  ;;  %1858 = vmatprep.subr.bf16.mxu1 %v3282_v9  ;;  %v3298_v20 = vld [vmem:[#allocation5 + $0xa4] ss:$16 sps:$4 sm:$0xff]   ;;  %v3300_v21 = vld [vmem:[#allocation5 + $0xac] ss:$16 sps:$4 sm:$0xff]   ;;  %v3302_v22 = vld [vmem:[#allocation5 + $0xa0] ss:$16 sps:$4 sm:$0xff]  }
  0x63   :  { %v3303_v23 = vld [vmem:[#allocation5 + $0xa8] ss:$16 sps:$4 sm:$0xff]   ;;  %v3304_v24 = vld [vmem:[#allocation5 + $0xc4] ss:$16 sps:$4 sm:$0xff]   ;;  %v3306_v25 = vld [vmem:[#allocation5 + $0xcc] ss:$16 sps:$4 sm:$0xff]  }
  0x64   :  { %v3308_v26 = vld [vmem:[#allocation5 + $0xc0] ss:$16 sps:$4 sm:$0xff]   ;;  %v3309_v27 = vld [vmem:[#allocation5 + $0xc8] ss:$16 sps:$4 sm:$0xff]   ;;  %v3310_v28 = vld [vmem:[#allocation5 + $0xe4] ss:$16 sps:$4 sm:$0xff]  }
  0x65   :  { %1695 = vmatpush1.bf16.msra.mxu0 %v3284_v10  ;;  %1859 = vmatpush1.bf16.msra.mxu1 %v3285_v11  ;;  %v3312_v29 = vld [vmem:[#allocation5 + $0xec] ss:$16 sps:$4 sm:$0xff]   ;;  %v3314_v30 = vld [vmem:[#allocation5 + $0xe0] ss:$16 sps:$4 sm:$0xff]   ;;  %v3315_v31 = vld [vmem:[#allocation5 + $0xe8] ss:$16 sps:$4 sm:$0xff]  }
  0x66   :  { %1696 = vmatprep.subr.bf16.mxu0 %v3286_v12  ;;  %1860 = vmatprep.subr.bf16.mxu1 %v3288_v13  ;;  %v3316_v32 = vld [vmem:[#allocation5 + $0x104] ss:$16 sps:$4 sm:$0xff]   ;;  %v3318_v33 = vld [vmem:[#allocation5 + $0x10c] ss:$16 sps:$4 sm:$0xff]   ;;  %v3320_v34 = vld [vmem:[#allocation5 + $0x100] ss:$16 sps:$4 sm:$0xff]  }
  0x67   :  { %v3321_v35 = vld [vmem:[#allocation5 + $0x108] ss:$16 sps:$4 sm:$0xff]   ;;  %v3322_v36 = vld [vmem:[#allocation5 + $0x124] ss:$16 sps:$4 sm:$0xff]   ;;  %v3324_v37 = vld [vmem:[#allocation5 + $0x12c] ss:$16 sps:$4 sm:$0xff]  }
  0x68   :  { %v3326_v38 = vld [vmem:[#allocation5 + $0x120] ss:$16 sps:$4 sm:$0xff]   ;;  %v3327_v39 = vld [vmem:[#allocation5 + $0x128] ss:$16 sps:$4 sm:$0xff]   ;;  %v3328_v40 = vld [vmem:[#allocation5 + $0x144] ss:$16 sps:$4 sm:$0xff]  }
  0x69   :  { %1697 = vmatpush1.bf16.msra.mxu0 %v3290_v14  ;;  %1861 = vmatpush1.bf16.msra.mxu1 %v3291_v15  ;;  %v3330_v41 = vld [vmem:[#allocation5 + $0x14c] ss:$16 sps:$4 sm:$0xff]   ;;  %v3332_v42 = vld [vmem:[#allocation5 + $0x140] ss:$16 sps:$4 sm:$0xff]   ;;  %v3333_v43 = vld [vmem:[#allocation5 + $0x148] ss:$16 sps:$4 sm:$0xff]  }
  0x6a   :  { %1698 = vmatprep.subr.bf16.mxu0 %v3292_v16  ;;  %1862 = vmatprep.subr.bf16.mxu1 %v3294_v17  ;;  %v3334_v44 = vld [vmem:[#allocation5 + $0x164] ss:$16 sps:$4 sm:$0xff]   ;;  %v3336_v45 = vld [vmem:[#allocation5 + $0x16c] ss:$16 sps:$4 sm:$0xff]   ;;  %v3338_v47 = vld [vmem:[#allocation5 + $0x160] ss:$16 sps:$4 sm:$0xff]  }
  0x6b   :  { %v100_v46 = vld [vmem:[#allocation2] sm:$0xff]  ;;  %v3339_v49 = vld [vmem:[#allocation5 + $0x168] ss:$16 sps:$4 sm:$0xff]   ;;  %v3342_v51 = vld [vmem:[#allocation5 + $0x18c] ss:$16 sps:$4 sm:$0xff]   ;;  %vm3932_vm0 = vmmov 0  }
  0x6c   :  { %v2816_v48 = vcombine.high %v100_v46, %v100_v46  ;;  %v3340_v50 = vld [vmem:[#allocation5 + $0x184] ss:$16 sps:$4 sm:$0xff]   ;;  %v3344_v52 = vld [vmem:[#allocation5 + $0x180] ss:$16 sps:$4 sm:$0xff]   ;;  %v3345_v53 = vld [vmem:[#allocation5 + $0x188] ss:$16 sps:$4 sm:$0xff]   ;;  %v2815_v4 = vcombine.low %v100_v46, %v100_v46 }
  0x6d   :  { %1699 = vmatpush1.bf16.msra.mxu0 %v3296_v18  ;;  %1863 = vmatpush1.bf16.msra.mxu1 %v3297_v19  ;;  %v3346_v54 = vld [vmem:[#allocation5 + $0x1a4] ss:$16 sps:$4 sm:$0xff]   ;;  %v3348_v55 = vld [vmem:[#allocation5 + $0x1ac] ss:$16 sps:$4 sm:$0xff]   ;;  %v3350_v56 = vld [vmem:[#allocation5 + $0x1a0] ss:$16 sps:$4 sm:$0xff]  }
  0x6e   :  { %1700 = vmatprep.subr.bf16.mxu0 %v3298_v20  ;;  %1864 = vmatprep.subr.bf16.mxu1 %v3300_v21  ;;  %v3351_v57 = vld [vmem:[#allocation5 + $0x1a8] ss:$16 sps:$4 sm:$0xff]   ;;  %v3352_v58 = vld [vmem:[#allocation5 + $0x1c4] ss:$16 sps:$4 sm:$0xff]   ;;  %v3354_v59 = vld [vmem:[#allocation5 + $0x1cc] ss:$16 sps:$4 sm:$0xff]  }
  0x6f   :  { %1722 = vmatprep.mubr.bf16.mxu0 %v2816_v48  ;;  %1886 = vmatprep.mubr.bf16.mxu1 %v2816_v48  ;;  %v3356_v60 = vld [vmem:[#allocation5 + $0x1c0] ss:$16 sps:$4 sm:$0xff]   ;;  %v3357_v61 = vld [vmem:[#allocation5 + $0x1c8] ss:$16 sps:$4 sm:$0xff]   ;;  %v3358_v62 = vld [vmem:[#allocation5 + $0x1e4] ss:$16 sps:$4 sm:$0xff]  }
  0x70   :  { %v3360_v63 = vld [vmem:[#allocation5 + $0x1ec] ss:$16 sps:$4 sm:$0xff]   ;;  %v3362_v0 = vld [vmem:[#allocation5 + $0x1e0] ss:$16 sps:$4 sm:$0xff]   ;;  %v3363_v1 = vld [vmem:[#allocation5 + $0x1e8] ss:$16 sps:$4 sm:$0xff]  }
  0x71   :  { %1701 = vmatpush1.bf16.msra.mxu0 %v3302_v22  ;;  %1865 = vmatpush1.bf16.msra.mxu1 %v3303_v23  ;;  %v3368_v2 = vld [vmem:[#allocation5 + $0x204] ss:$16 sps:$4 sm:$0xff]   ;;  %v3371_v3 = vld [vmem:[#allocation5 + $0x20c] ss:$16 sps:$4 sm:$0xff]   ;;  %v3366_v5 = vld [vmem:[#allocation5 + $0x200] ss:$16 sps:$4 sm:$0xff]  }
  0x72   :  { %1702 = vmatprep.subr.bf16.mxu0 %v3304_v24  ;;  %1866 = vmatprep.subr.bf16.mxu1 %v3306_v25  ;;  %v3369_v6 = vld [vmem:[#allocation5 + $0x208] ss:$16 sps:$4 sm:$0xff]   ;;  %v3374_v7 = vld [vmem:[#allocation5 + $0x224] ss:$16 sps:$4 sm:$0xff]   ;;  %v3377_v8 = vld [vmem:[#allocation5 + $0x22c] ss:$16 sps:$4 sm:$0xff]  }
  0x73   :  { %v3372_v9 = vld [vmem:[#allocation5 + $0x220] ss:$16 sps:$4 sm:$0xff]   ;;  %v3375_v10 = vld [vmem:[#allocation5 + $0x228] ss:$16 sps:$4 sm:$0xff]   ;;  %v3380_v11 = vld [vmem:[#allocation5 + $0x244] ss:$16 sps:$4 sm:$0xff]  }
  0x74   :  { %v3383_v12 = vld [vmem:[#allocation5 + $0x24c] ss:$16 sps:$4 sm:$0xff]   ;;  %v3378_v13 = vld [vmem:[#allocation5 + $0x240] ss:$16 sps:$4 sm:$0xff]   ;;  %v3381_v14 = vld [vmem:[#allocation5 + $0x248] ss:$16 sps:$4 sm:$0xff]  }
  0x75   :  { %1703 = vmatpush1.bf16.msra.mxu0 %v3308_v26  ;;  %1867 = vmatpush1.bf16.msra.mxu1 %v3309_v27  ;;  %v3386_v15 = vld [vmem:[#allocation5 + $0x264] ss:$16 sps:$4 sm:$0xff]   ;;  %v3389_v16 = vld [vmem:[#allocation5 + $0x26c] ss:$16 sps:$4 sm:$0xff]   ;;  %v3384_v17 = vld [vmem:[#allocation5 + $0x260] ss:$16 sps:$4 sm:$0xff]  }
  0x76   :  { %1704 = vmatprep.subr.bf16.mxu0 %v3310_v28  ;;  %1868 = vmatprep.subr.bf16.mxu1 %v3312_v29  ;;  %v3387_v18 = vld [vmem:[#allocation5 + $0x268] ss:$16 sps:$4 sm:$0xff]   ;;  %v3392_v19 = vld [vmem:[#allocation5 + $0x284] ss:$16 sps:$4 sm:$0xff]   ;;  %v3395_v20 = vld [vmem:[#allocation5 + $0x28c] ss:$16 sps:$4 sm:$0xff]  }
  0x77   :  { %v3390_v21 = vld [vmem:[#allocation5 + $0x280] ss:$16 sps:$4 sm:$0xff]   ;;  %v3393_v22 = vld [vmem:[#allocation5 + $0x288] ss:$16 sps:$4 sm:$0xff]   ;;  %v3398_v23 = vld [vmem:[#allocation5 + $0x2a4] ss:$16 sps:$4 sm:$0xff]  }
  0x78   :  { %v3401_v24 = vld [vmem:[#allocation5 + $0x2ac] ss:$16 sps:$4 sm:$0xff]   ;;  %v3396_v25 = vld [vmem:[#allocation5 + $0x2a0] ss:$16 sps:$4 sm:$0xff]   ;;  %v3399_v26 = vld [vmem:[#allocation5 + $0x2a8] ss:$16 sps:$4 sm:$0xff]  }
  0x79   :  { %1705 = vmatpush1.bf16.msra.mxu0 %v3314_v30  ;;  %1869 = vmatpush1.bf16.msra.mxu1 %v3315_v31  ;;  %v3404_v27 = vld [vmem:[#allocation5 + $0x2c4] ss:$16 sps:$4 sm:$0xff]   ;;  %v3407_v28 = vld [vmem:[#allocation5 + $0x2cc] ss:$16 sps:$4 sm:$0xff]   ;;  %v3402_v31 = vld [vmem:[#allocation5 + $0x2c0] ss:$16 sps:$4 sm:$0xff]  }
  0x7a   :  { %1706 = vmatprep.subr.bf16.mxu0 %v3316_v32  ;;  %1870 = vmatprep.subr.bf16.mxu1 %v3318_v33  ;;  %v4057_v29 = vld [vmem:[#allocation2 + $0x8] sm:$0xff]  ;;  %v3410_v33 = vld [vmem:[#allocation5 + $0x2e4] ss:$16 sps:$4 sm:$0xff]   ;;  %s3933_s12 = smov [#allocation11]  }
  0x7b   :  { %v2818_v30 = vcombine.high %v4057_v29, %v4057_v29  ;;  %v3405_v32 = vld [vmem:[#allocation5 + $0x2c8] ss:$16 sps:$4 sm:$0xff]   ;;  %v3431_v46 = vld [vmem:[#allocation5 + $0x34c] ss:$16 sps:$4 sm:$0xff]   ;;  %s2804_s13 = sshll.u32 %s3933_s12, 4  ;;  %s2805_s13 = int_to_ptr.vmem [resolvable:$true] %s2804_s13 }
  0x7c   :  { %v3429_v48 = vld [vmem:[#allocation5 + $0x348] ss:$16 sps:$4 sm:$0xff]   ;;  %p3895_p13 = scmp.lt.s32.totalorder %s2805_s13, %s2805_s13 }
  0x7d   :  { %1707 = vmatpush1.bf16.msra.mxu0 %v3320_v34  ;;  %1871 = vmatpush1.bf16.msra.mxu1 %v3321_v35  ;;  %v3413_v34 = vld [vmem:[#allocation5 + $0x2ec] ss:$16 sps:$4 sm:$0xff]   ;;  %v3408_v35 = vld [vmem:[#allocation5 + $0x2e0] ss:$16 sps:$4 sm:$0xff]  }
  0x7e   :  { %1708 = vmatprep.subr.bf16.mxu0 %v3322_v36  ;;  %1872 = vmatprep.subr.bf16.mxu1 %v3324_v37  ;;  %v3411_v36 = vld [vmem:[#allocation5 + $0x2e8] ss:$16 sps:$4 sm:$0xff]   ;;  %v3416_v37 = vld [vmem:[#allocation5 + $0x304] ss:$16 sps:$4 sm:$0xff]  }
  0x81   :  { %1709 = vmatpush1.bf16.msra.mxu0 %v3326_v38  ;;  %1873 = vmatpush1.bf16.msra.mxu1 %v3327_v39  ;;  %v3419_v38 = vld [vmem:[#allocation5 + $0x30c] ss:$16 sps:$4 sm:$0xff]   ;;  %v3414_v39 = vld [vmem:[#allocation5 + $0x300] ss:$16 sps:$4 sm:$0xff]  }
  0x82   :  { %1710 = vmatprep.subr.bf16.mxu0 %v3328_v40  ;;  %1874 = vmatprep.subr.bf16.mxu1 %v3330_v41  ;;  %v3417_v40 = vld [vmem:[#allocation5 + $0x308] ss:$16 sps:$4 sm:$0xff]   ;;  %v3422_v41 = vld [vmem:[#allocation5 + $0x324] ss:$16 sps:$4 sm:$0xff]  }
  0x85   :  { %1711 = vmatpush1.bf16.msra.mxu0 %v3332_v42  ;;  %1875 = vmatpush1.bf16.msra.mxu1 %v3333_v43  ;;  %v3425_v42 = vld [vmem:[#allocation5 + $0x32c] ss:$16 sps:$4 sm:$0xff]   ;;  %v3420_v43 = vld [vmem:[#allocation5 + $0x320] ss:$16 sps:$4 sm:$0xff]  }
  0x86   :  { %1712 = vmatprep.subr.bf16.mxu0 %v3334_v44  ;;  %1876 = vmatprep.subr.bf16.mxu1 %v3336_v45  ;;  %v3423_v44 = vld [vmem:[#allocation5 + $0x328] ss:$16 sps:$4 sm:$0xff]   ;;  %v3428_v45 = vld [vmem:[#allocation5 + $0x344] ss:$16 sps:$4 sm:$0xff]  }
  0x89   :  { %1713 = vmatpush1.bf16.msra.mxu0 %v3338_v47  ;;  %1877 = vmatpush1.bf16.msra.mxu1 %v3339_v49  ;;  %v3426_v47 = vld [vmem:[#allocation5 + $0x340] ss:$16 sps:$4 sm:$0xff]   ;;  %v3434_v49 = vld [vmem:[#allocation5 + $0x364] ss:$16 sps:$4 sm:$0xff]  }
  0x8a   :  { %1714 = vmatprep.subr.bf16.mxu0 %v3340_v50  ;;  %1878 = vmatprep.subr.bf16.mxu1 %v3342_v51  ;;  %v3437_v50 = vld [vmem:[#allocation5 + $0x36c] ss:$16 sps:$4 sm:$0xff]   ;;  %v3432_v51 = vld [vmem:[#allocation5 + $0x360] ss:$16 sps:$4 sm:$0xff]  }
  0x8d   :  { %1715 = vmatpush1.bf16.msra.mxu0 %v3344_v52  ;;  %1879 = vmatpush1.bf16.msra.mxu1 %v3345_v53  ;;  %v3435_v52 = vld [vmem:[#allocation5 + $0x368] ss:$16 sps:$4 sm:$0xff]   ;;  %v3440_v53 = vld [vmem:[#allocation5 + $0x384] ss:$16 sps:$4 sm:$0xff]  }
  0x8e   :  { %1716 = vmatprep.subr.bf16.mxu0 %v3346_v54  ;;  %1880 = vmatprep.subr.bf16.mxu1 %v3348_v55  ;;  %v3443_v54 = vld [vmem:[#allocation5 + $0x38c] ss:$16 sps:$4 sm:$0xff]   ;;  %v3438_v55 = vld [vmem:[#allocation5 + $0x380] ss:$16 sps:$4 sm:$0xff]  }
  0x91   :  { %1717 = vmatpush1.bf16.msra.mxu0 %v3350_v56  ;;  %1881 = vmatpush1.bf16.msra.mxu1 %v3351_v57  ;;  %v3441_v56 = vld [vmem:[#allocation5 + $0x388] ss:$16 sps:$4 sm:$0xff]   ;;  %v3446_v57 = vld [vmem:[#allocation5 + $0x3a4] ss:$16 sps:$4 sm:$0xff]  }
  0x92   :  { %1718 = vmatprep.subr.bf16.mxu0 %v3352_v58  ;;  %1882 = vmatprep.subr.bf16.mxu1 %v3354_v59  ;;  %v3449_v58 = vld [vmem:[#allocation5 + $0x3ac] ss:$16 sps:$4 sm:$0xff]   ;;  %v3444_v59 = vld [vmem:[#allocation5 + $0x3a0] ss:$16 sps:$4 sm:$0xff]  }
  0x95   :  { %1719 = vmatpush1.bf16.msra.mxu0 %v3356_v60  ;;  %1883 = vmatpush1.bf16.msra.mxu1 %v3357_v61  ;;  %v3447_v60 = vld [vmem:[#allocation5 + $0x3a8] ss:$16 sps:$4 sm:$0xff]   ;;  %v3452_v61 = vld [vmem:[#allocation5 + $0x3c4] ss:$16 sps:$4 sm:$0xff]  }
  0x96   :  { %1720 = vmatprep.subr.bf16.mxu0 %v3358_v62  ;;  %1884 = vmatprep.subr.bf16.mxu1 %v3360_v63  ;;  %v3455_v62 = vld [vmem:[#allocation5 + $0x3cc] ss:$16 sps:$4 sm:$0xff]   ;;  %v3450_v63 = vld [vmem:[#allocation5 + $0x3c0] ss:$16 sps:$4 sm:$0xff]  }
  0x99   :  { %1721 = vmatpush1.bf16.msra.mxu0 %v3362_v0  ;;  %1885 = vmatpush1.bf16.msra.mxu1 %v3363_v1  ;;  %v3453_v0 = vld [vmem:[#allocation5 + $0x3c8] ss:$16 sps:$4 sm:$0xff]   ;;  %v3458_v1 = vld [vmem:[#allocation5 + $0x3e4] ss:$16 sps:$4 sm:$0xff]  }
  0x9a   :  { %1731 = vmatprep.subr.bf16.mxu0 %v3368_v2  ;;  %1895 = vmatprep.subr.bf16.mxu1 %v3371_v3  ;;  %v3461_v2 = vld [vmem:[#allocation5 + $0x3ec] ss:$16 sps:$4 sm:$0xff]   ;;  %v3456_v3 = vld [vmem:[#allocation5 + $0x3e0] ss:$16 sps:$4 sm:$0xff]  }
  0x9c   :  { %1723 = vmatmul.mubr.bf16.vlgmr.msra.gmra.mrb[0].mxu0 %v2815_v4  ;;  %1887 = vmatmul.mubr.bf16.vlgmr.msra.gmra.mrb[0].mxu1 %v2815_v4  ;;  %v3459_v4 = vld [vmem:[#allocation5 + $0x3e8] ss:$16 sps:$4 sm:$0xff]  }
  0x9d   :  { %1732 = vmatpush1.bf16.msra.mxu0 %v3366_v5  ;;  %1896 = vmatpush1.bf16.msra.mxu1 %v3369_v6  ;;  %v3466_v5 = vld [vmem:[#allocation5 + $0x404] ss:$16 sps:$4 sm:$0xff]   ;;  %v3469_v6 = vld [vmem:[#allocation5 + $0x40c] ss:$16 sps:$4 sm:$0xff]  }
  0x9e   :  { %1733 = vmatprep.subr.bf16.mxu0 %v3374_v7  ;;  %1897 = vmatprep.subr.bf16.mxu1 %v3377_v8  ;;  %v2817_v7 = vcombine.low %v4057_v29, %v4057_v29  ;;  %v3464_v8 = vld [vmem:[#allocation5 + $0x400] ss:$16 sps:$4 sm:$0xff]   ;;  %v3499_v29 = vld [vmem:[#allocation5 + $0x4ac] ss:$16 sps:$4 sm:$0xff]  }
  0x9f   :  { %1763 = vmatprep.mubr.bf16.mxu0 %v2818_v30  ;;  %1927 = vmatprep.mubr.bf16.mxu1 %v2818_v30  ;;  %v3494_v30 = vld [vmem:[#allocation5 + $0x4a0] ss:$16 sps:$4 sm:$0xff]  }
  0xa1   :  { %1734 = vmatpush1.bf16.msra.mxu0 %v3372_v9  ;;  %1898 = vmatpush1.bf16.msra.mxu1 %v3375_v10  ;;  %v3467_v9 = vld [vmem:[#allocation5 + $0x408] ss:$16 sps:$4 sm:$0xff]   ;;  %v3472_v10 = vld [vmem:[#allocation5 + $0x424] ss:$16 sps:$4 sm:$0xff]  }
  0xa2   :  { %1735 = vmatprep.subr.bf16.mxu0 %v3380_v11  ;;  %1899 = vmatprep.subr.bf16.mxu1 %v3383_v12  ;;  %v4063_v11 = vld [vmem:[#allocation2 + $0x10] sm:$0xff]  ;;  %v3475_v12 = vld [vmem:[#allocation5 + $0x42c] ss:$16 sps:$4 sm:$0xff]  }
  0xa5   :  { %1736 = vmatpush1.bf16.msra.mxu0 %v3378_v13  ;;  %1900 = vmatpush1.bf16.msra.mxu1 %v3381_v14  ;;  %v2820_v13 = vcombine.high %v4063_v11, %v4063_v11  ;;  %v3470_v14 = vld [vmem:[#allocation5 + $0x420] ss:$16 sps:$4 sm:$0xff]  }
  0xa6   :  { %1737 = vmatprep.subr.bf16.mxu0 %v3386_v15  ;;  %1901 = vmatprep.subr.bf16.mxu1 %v3389_v16  ;;  %v3473_v15 = vld [vmem:[#allocation5 + $0x428] ss:$16 sps:$4 sm:$0xff]   ;;  %v3478_v16 = vld [vmem:[#allocation5 + $0x444] ss:$16 sps:$4 sm:$0xff]  }
  0xa9   :  { %1738 = vmatpush1.bf16.msra.mxu0 %v3384_v17  ;;  %1902 = vmatpush1.bf16.msra.mxu1 %v3387_v18  ;;  %v3481_v17 = vld [vmem:[#allocation5 + $0x44c] ss:$16 sps:$4 sm:$0xff]   ;;  %v3476_v18 = vld [vmem:[#allocation5 + $0x440] ss:$16 sps:$4 sm:$0xff]  }
  0xaa   :  { %1739 = vmatprep.subr.bf16.mxu0 %v3392_v19  ;;  %1903 = vmatprep.subr.bf16.mxu1 %v3395_v20  ;;  %v3479_v19 = vld [vmem:[#allocation5 + $0x448] ss:$16 sps:$4 sm:$0xff]   ;;  %v3484_v20 = vld [vmem:[#allocation5 + $0x464] ss:$16 sps:$4 sm:$0xff]  }
  0xad   :  { %1740 = vmatpush1.bf16.msra.mxu0 %v3390_v21  ;;  %1904 = vmatpush1.bf16.msra.mxu1 %v3393_v22  ;;  %v3487_v21 = vld [vmem:[#allocation5 + $0x46c] ss:$16 sps:$4 sm:$0xff]   ;;  %v3482_v22 = vld [vmem:[#allocation5 + $0x460] ss:$16 sps:$4 sm:$0xff]  }
  0xae   :  { %1741 = vmatprep.subr.bf16.mxu0 %v3398_v23  ;;  %1905 = vmatprep.subr.bf16.mxu1 %v3401_v24  ;;  %v3485_v23 = vld [vmem:[#allocation5 + $0x468] ss:$16 sps:$4 sm:$0xff]   ;;  %v3490_v24 = vld [vmem:[#allocation5 + $0x484] ss:$16 sps:$4 sm:$0xff]  }
  0xb1   :  { %1742 = vmatpush1.bf16.msra.mxu0 %v3396_v25  ;;  %1906 = vmatpush1.bf16.msra.mxu1 %v3399_v26  ;;  %v3493_v25 = vld [vmem:[#allocation5 + $0x48c] ss:$16 sps:$4 sm:$0xff]   ;;  %v3488_v26 = vld [vmem:[#allocation5 + $0x480] ss:$16 sps:$4 sm:$0xff]  }
  0xb2   :  { %1743 = vmatprep.subr.bf16.mxu0 %v3404_v27  ;;  %1907 = vmatprep.subr.bf16.mxu1 %v3407_v28  ;;  %v3491_v27 = vld [vmem:[#allocation5 + $0x488] ss:$16 sps:$4 sm:$0xff]   ;;  %v3496_v28 = vld [vmem:[#allocation5 + $0x4a4] ss:$16 sps:$4 sm:$0xff]  }
  0xb5   :  { %1744 = vmatpush1.bf16.msra.mxu0 %v3402_v31  ;;  %1908 = vmatpush1.bf16.msra.mxu1 %v3405_v32  ;;  %v3497_v31 = vld [vmem:[#allocation5 + $0x4a8] ss:$16 sps:$4 sm:$0xff]   ;;  %v3502_v32 = vld [vmem:[#allocation5 + $0x4c4] ss:$16 sps:$4 sm:$0xff]  }
  0xb6   :  { %1745 = vmatprep.subr.bf16.mxu0 %v3410_v33  ;;  %1909 = vmatprep.subr.bf16.mxu1 %v3413_v34  ;;  %v3505_v33 = vld [vmem:[#allocation5 + $0x4cc] ss:$16 sps:$4 sm:$0xff]   ;;  %v3500_v34 = vld [vmem:[#allocation5 + $0x4c0] ss:$16 sps:$4 sm:$0xff]  }
  0xb9   :  { %1746 = vmatpush1.bf16.msra.mxu0 %v3408_v35  ;;  %1910 = vmatpush1.bf16.msra.mxu1 %v3411_v36  ;;  %v3503_v35 = vld [vmem:[#allocation5 + $0x4c8] ss:$16 sps:$4 sm:$0xff]   ;;  %v3508_v36 = vld [vmem:[#allocation5 + $0x4e4] ss:$16 sps:$4 sm:$0xff]  }
  0xba   :  { %1747 = vmatprep.subr.bf16.mxu0 %v3416_v37  ;;  %1911 = vmatprep.subr.bf16.mxu1 %v3419_v38  ;;  %v3511_v37 = vld [vmem:[#allocation5 + $0x4ec] ss:$16 sps:$4 sm:$0xff]   ;;  %v3506_v38 = vld [vmem:[#allocation5 + $0x4e0] ss:$16 sps:$4 sm:$0xff]  }
  0xbd   :  { %1748 = vmatpush1.bf16.msra.mxu0 %v3414_v39  ;;  %1912 = vmatpush1.bf16.msra.mxu1 %v3417_v40  ;;  %v3509_v39 = vld [vmem:[#allocation5 + $0x4e8] ss:$16 sps:$4 sm:$0xff]   ;;  %v3514_v40 = vld [vmem:[#allocation5 + $0x504] ss:$16 sps:$4 sm:$0xff]  }
  0xbe   :  { %1749 = vmatprep.subr.bf16.mxu0 %v3422_v41  ;;  %1913 = vmatprep.subr.bf16.mxu1 %v3425_v42  ;;  %v3517_v41 = vld [vmem:[#allocation5 + $0x50c] ss:$16 sps:$4 sm:$0xff]   ;;  %v3512_v42 = vld [vmem:[#allocation5 + $0x500] ss:$16 sps:$4 sm:$0xff]  }
  0xc1   :  { %1750 = vmatpush1.bf16.msra.mxu0 %v3420_v43  ;;  %1914 = vmatpush1.bf16.msra.mxu1 %v3423_v44  ;;  %v3515_v43 = vld [vmem:[#allocation5 + $0x508] ss:$16 sps:$4 sm:$0xff]   ;;  %v3520_v44 = vld [vmem:[#allocation5 + $0x524] ss:$16 sps:$4 sm:$0xff]  }
  0xc2   :  { %1751 = vmatprep.subr.bf16.mxu0 %v3428_v45  ;;  %1915 = vmatprep.subr.bf16.mxu1 %v3431_v46  ;;  %v3523_v45 = vld [vmem:[#allocation5 + $0x52c] ss:$16 sps:$4 sm:$0xff]   ;;  %v3518_v46 = vld [vmem:[#allocation5 + $0x520] ss:$16 sps:$4 sm:$0xff]  }
  0xc5   :  { %1752 = vmatpush1.bf16.msra.mxu0 %v3426_v47  ;;  %1916 = vmatpush1.bf16.msra.mxu1 %v3429_v48  ;;  %v3521_v47 = vld [vmem:[#allocation5 + $0x528] ss:$16 sps:$4 sm:$0xff]   ;;  %v3526_v48 = vld [vmem:[#allocation5 + $0x544] ss:$16 sps:$4 sm:$0xff]  }
  0xc6   :  { %1753 = vmatprep.subr.bf16.mxu0 %v3434_v49  ;;  %1917 = vmatprep.subr.bf16.mxu1 %v3437_v50  ;;  %v3529_v49 = vld [vmem:[#allocation5 + $0x54c] ss:$16 sps:$4 sm:$0xff]   ;;  %v3524_v50 = vld [vmem:[#allocation5 + $0x540] ss:$16 sps:$4 sm:$0xff]  }
  0xc9   :  { %1754 = vmatpush1.bf16.msra.mxu0 %v3432_v51  ;;  %1918 = vmatpush1.bf16.msra.mxu1 %v3435_v52  ;;  %v3527_v51 = vld [vmem:[#allocation5 + $0x548] ss:$16 sps:$4 sm:$0xff]   ;;  %v3532_v52 = vld [vmem:[#allocation5 + $0x564] ss:$16 sps:$4 sm:$0xff]  }
  0xca   :  { %1755 = vmatprep.subr.bf16.mxu0 %v3440_v53  ;;  %1919 = vmatprep.subr.bf16.mxu1 %v3443_v54  ;;  %v3535_v53 = vld [vmem:[#allocation5 + $0x56c] ss:$16 sps:$4 sm:$0xff]   ;;  %v3530_v54 = vld [vmem:[#allocation5 + $0x560] ss:$16 sps:$4 sm:$0xff]  }
  0xcd   :  { %1756 = vmatpush1.bf16.msra.mxu0 %v3438_v55  ;;  %1920 = vmatpush1.bf16.msra.mxu1 %v3441_v56  ;;  %v3533_v55 = vld [vmem:[#allocation5 + $0x568] ss:$16 sps:$4 sm:$0xff]   ;;  %v3538_v56 = vld [vmem:[#allocation5 + $0x584] ss:$16 sps:$4 sm:$0xff]  }
  0xce   :  { %1757 = vmatprep.subr.bf16.mxu0 %v3446_v57  ;;  %1921 = vmatprep.subr.bf16.mxu1 %v3449_v58  ;;  %v3541_v57 = vld [vmem:[#allocation5 + $0x58c] ss:$16 sps:$4 sm:$0xff]   ;;  %v3536_v58 = vld [vmem:[#allocation5 + $0x580] ss:$16 sps:$4 sm:$0xff]  }
  0xd1   :  { %1758 = vmatpush1.bf16.msra.mxu0 %v3444_v59  ;;  %1922 = vmatpush1.bf16.msra.mxu1 %v3447_v60  ;;  %v3539_v59 = vld [vmem:[#allocation5 + $0x588] ss:$16 sps:$4 sm:$0xff]   ;;  %v3544_v60 = vld [vmem:[#allocation5 + $0x5a4] ss:$16 sps:$4 sm:$0xff]  }
  0xd2   :  { %1759 = vmatprep.subr.bf16.mxu0 %v3452_v61  ;;  %1923 = vmatprep.subr.bf16.mxu1 %v3455_v62  ;;  %v3547_v61 = vld [vmem:[#allocation5 + $0x5ac] ss:$16 sps:$4 sm:$0xff]   ;;  %v3542_v62 = vld [vmem:[#allocation5 + $0x5a0] ss:$16 sps:$4 sm:$0xff]  }
  0xd5   :  { %1760 = vmatpush1.bf16.msra.mxu0 %v3450_v63  ;;  %1924 = vmatpush1.bf16.msra.mxu1 %v3453_v0  ;;  %v3545_v63 = vld [vmem:[#allocation5 + $0x5a8] ss:$16 sps:$4 sm:$0xff]   ;;  %v3550_v0 = vld [vmem:[#allocation5 + $0x5c4] ss:$16 sps:$4 sm:$0xff]  }
  0xd6   :  { %1761 = vmatprep.subr.bf16.mxu0 %v3458_v1  ;;  %1925 = vmatprep.subr.bf16.mxu1 %v3461_v2  ;;  %v3553_v1 = vld [vmem:[#allocation5 + $0x5cc] ss:$16 sps:$4 sm:$0xff]   ;;  %v3548_v2 = vld [vmem:[#allocation5 + $0x5c0] ss:$16 sps:$4 sm:$0xff]  }
  0xd9   :  { %1762 = vmatpush1.bf16.msra.mxu0 %v3456_v3  ;;  %1926 = vmatpush1.bf16.msra.mxu1 %v3459_v4  ;;  %v3551_v3 = vld [vmem:[#allocation5 + $0x5c8] ss:$16 sps:$4 sm:$0xff]   ;;  %v3556_v4 = vld [vmem:[#allocation5 + $0x5e4] ss:$16 sps:$4 sm:$0xff]  }
  0xda   :  { %1772 = vmatprep.subr.bf16.mxu0 %v3466_v5  ;;  %1936 = vmatprep.subr.bf16.mxu1 %v3469_v6  ;;  %v3559_v5 = vld [vmem:[#allocation5 + $0x5ec] ss:$16 sps:$4 sm:$0xff]   ;;  %v3554_v6 = vld [vmem:[#allocation5 + $0x5e0] ss:$16 sps:$4 sm:$0xff]  }
  0xdc   :  { %1764 = vmatmul.mubr.bf16.vlgmr.msra.gmra.mrb[0].mxu0 %v2817_v7  ;;  %1928 = vmatmul.mubr.bf16.vlgmr.msra.gmra.mrb[0].mxu1 %v2817_v7  ;;  %v3557_v7 = vld [vmem:[#allocation5 + $0x5e8] ss:$16 sps:$4 sm:$0xff]  }
  0xdd   :  { %1773 = vmatpush1.bf16.msra.mxu0 %v3464_v8  ;;  %1937 = vmatpush1.bf16.msra.mxu1 %v3467_v9  ;;  %v3564_v8 = vld [vmem:[#allocation5 + $0x604] ss:$16 sps:$4 sm:$0xff]   ;;  %v3567_v9 = vld [vmem:[#allocation5 + $0x60c] ss:$16 sps:$4 sm:$0xff]  }
  0xde   :  { %1774 = vmatprep.subr.bf16.mxu0 %v3472_v10  ;;  %1938 = vmatprep.subr.bf16.mxu1 %v3475_v12  ;;  %v3562_v10 = vld [vmem:[#allocation5 + $0x600] ss:$16 sps:$4 sm:$0xff]   ;;  %v3565_v12 = vld [vmem:[#allocation5 + $0x608] ss:$16 sps:$4 sm:$0xff]  }
  0xdf   :  { %1804 = vmatprep.mubr.bf16.mxu0 %v2820_v13  ;;  %1968 = vmatprep.mubr.bf16.mxu1 %v2820_v13  ;;  %v4067_v13 = vld [vmem:[#allocation2 + $0x18] sm:$0xff] }
  0xe1   :  { %1775 = vmatpush1.bf16.msra.mxu0 %v3470_v14  ;;  %1939 = vmatpush1.bf16.msra.mxu1 %v3473_v15  ;;  %v2819_v14 = vcombine.low %v4063_v11, %v4063_v11  ;;  %v3570_v15 = vld [vmem:[#allocation5 + $0x624] ss:$16 sps:$4 sm:$0xff]   ;;  %v3574_v11 = vld [vmem:[#allocation5 + $0x640] ss:$16 sps:$4 sm:$0xff]  }
  0xe2   :  { %1776 = vmatprep.subr.bf16.mxu0 %v3478_v16  ;;  %1940 = vmatprep.subr.bf16.mxu1 %v3481_v17  ;;  %v3573_v16 = vld [vmem:[#allocation5 + $0x62c] ss:$16 sps:$4 sm:$0xff]   ;;  %v3568_v17 = vld [vmem:[#allocation5 + $0x620] ss:$16 sps:$4 sm:$0xff]  }
  0xe5   :  { %1777 = vmatpush1.bf16.msra.mxu0 %v3476_v18  ;;  %1941 = vmatpush1.bf16.msra.mxu1 %v3479_v19  ;;  %v3571_v18 = vld [vmem:[#allocation5 + $0x628] ss:$16 sps:$4 sm:$0xff]   ;;  %v2822_v19 = vcombine.high %v4067_v13, %v4067_v13 }
  0xe6   :  { %1778 = vmatprep.subr.bf16.mxu0 %v3484_v20  ;;  %1942 = vmatprep.subr.bf16.mxu1 %v3487_v21  ;;  %v3576_v20 = vld [vmem:[#allocation5 + $0x644] ss:$16 sps:$4 sm:$0xff]   ;;  %v3579_v21 = vld [vmem:[#allocation5 + $0x64c] ss:$16 sps:$4 sm:$0xff]  }
  0xe9   :  { %1779 = vmatpush1.bf16.msra.mxu0 %v3482_v22  ;;  %1943 = vmatpush1.bf16.msra.mxu1 %v3485_v23  ;;  %v3577_v22 = vld [vmem:[#allocation5 + $0x648] ss:$16 sps:$4 sm:$0xff]   ;;  %v3582_v23 = vld [vmem:[#allocation5 + $0x664] ss:$16 sps:$4 sm:$0xff]  }
  0xea   :  { %1780 = vmatprep.subr.bf16.mxu0 %v3490_v24  ;;  %1944 = vmatprep.subr.bf16.mxu1 %v3493_v25  ;;  %v3585_v24 = vld [vmem:[#allocation5 + $0x66c] ss:$16 sps:$4 sm:$0xff]   ;;  %v3580_v25 = vld [vmem:[#allocation5 + $0x660] ss:$16 sps:$4 sm:$0xff]  }
  0xed   :  { %1781 = vmatpush1.bf16.msra.mxu0 %v3488_v26  ;;  %1945 = vmatpush1.bf16.msra.mxu1 %v3491_v27  ;;  %v3583_v26 = vld [vmem:[#allocation5 + $0x668] ss:$16 sps:$4 sm:$0xff]   ;;  %v3588_v27 = vld [vmem:[#allocation5 + $0x684] ss:$16 sps:$4 sm:$0xff]  }
  0xee   :  { %1782 = vmatprep.subr.bf16.mxu0 %v3496_v28  ;;  %1946 = vmatprep.subr.bf16.mxu1 %v3499_v29  ;;  %v3591_v28 = vld [vmem:[#allocation5 + $0x68c] ss:$16 sps:$4 sm:$0xff]   ;;  %v3586_v29 = vld [vmem:[#allocation5 + $0x680] ss:$16 sps:$4 sm:$0xff]  }
  0xf1   :  { %1783 = vmatpush1.bf16.msra.mxu0 %v3494_v30  ;;  %1947 = vmatpush1.bf16.msra.mxu1 %v3497_v31  ;;  %v3589_v30 = vld [vmem:[#allocation5 + $0x688] ss:$16 sps:$4 sm:$0xff]   ;;  %v3594_v31 = vld [vmem:[#allocation5 + $0x6a4] ss:$16 sps:$4 sm:$0xff]  }
  0xf2   :  { %1784 = vmatprep.subr.bf16.mxu0 %v3502_v32  ;;  %1948 = vmatprep.subr.bf16.mxu1 %v3505_v33  ;;  %v3597_v32 = vld [vmem:[#allocation5 + $0x6ac] ss:$16 sps:$4 sm:$0xff]   ;;  %v3592_v33 = vld [vmem:[#allocation5 + $0x6a0] ss:$16 sps:$4 sm:$0xff]  }
  0xf5   :  { %1785 = vmatpush1.bf16.msra.mxu0 %v3500_v34  ;;  %1949 = vmatpush1.bf16.msra.mxu1 %v3503_v35  ;;  %v3595_v34 = vld [vmem:[#allocation5 + $0x6a8] ss:$16 sps:$4 sm:$0xff]   ;;  %v3600_v35 = vld [vmem:[#allocation5 + $0x6c4] ss:$16 sps:$4 sm:$0xff]  }
  0xf6   :  { %1786 = vmatprep.subr.bf16.mxu0 %v3508_v36  ;;  %1950 = vmatprep.subr.bf16.mxu1 %v3511_v37  ;;  %v3603_v36 = vld [vmem:[#allocation5 + $0x6cc] ss:$16 sps:$4 sm:$0xff]   ;;  %v3598_v37 = vld [vmem:[#allocation5 + $0x6c0] ss:$16 sps:$4 sm:$0xff]  }
  0xf9   :  { %1787 = vmatpush1.bf16.msra.mxu0 %v3506_v38  ;;  %1951 = vmatpush1.bf16.msra.mxu1 %v3509_v39  ;;  %v3601_v38 = vld [vmem:[#allocation5 + $0x6c8] ss:$16 sps:$4 sm:$0xff]   ;;  %v3606_v39 = vld [vmem:[#allocation5 + $0x6e4] ss:$16 sps:$4 sm:$0xff]  }
  0xfa   :  { %1788 = vmatprep.subr.bf16.mxu0 %v3514_v40  ;;  %1952 = vmatprep.subr.bf16.mxu1 %v3517_v41  ;;  %v3609_v40 = vld [vmem:[#allocation5 + $0x6ec] ss:$16 sps:$4 sm:$0xff]   ;;  %v3604_v41 = vld [vmem:[#allocation5 + $0x6e0] ss:$16 sps:$4 sm:$0xff]  }
  0xfd   :  { %1789 = vmatpush1.bf16.msra.mxu0 %v3512_v42  ;;  %1953 = vmatpush1.bf16.msra.mxu1 %v3515_v43  ;;  %v3607_v42 = vld [vmem:[#allocation5 + $0x6e8] ss:$16 sps:$4 sm:$0xff]   ;;  %v3612_v43 = vld [vmem:[#allocation5 + $0x704] ss:$16 sps:$4 sm:$0xff]  }
  0xfe   :  { %1790 = vmatprep.subr.bf16.mxu0 %v3520_v44  ;;  %1954 = vmatprep.subr.bf16.mxu1 %v3523_v45  ;;  %v3615_v44 = vld [vmem:[#allocation5 + $0x70c] ss:$16 sps:$4 sm:$0xff]   ;;  %v3610_v45 = vld [vmem:[#allocation5 + $0x700] ss:$16 sps:$4 sm:$0xff]  }
 0x101   :  { %1791 = vmatpush1.bf16.msra.mxu0 %v3518_v46  ;;  %1955 = vmatpush1.bf16.msra.mxu1 %v3521_v47  ;;  %v3613_v46 = vld [vmem:[#allocation5 + $0x708] ss:$16 sps:$4 sm:$0xff]   ;;  %v3618_v47 = vld [vmem:[#allocation5 + $0x724] ss:$16 sps:$4 sm:$0xff]  }
 0x102   :  { %1792 = vmatprep.subr.bf16.mxu0 %v3526_v48  ;;  %1956 = vmatprep.subr.bf16.mxu1 %v3529_v49  ;;  %v3621_v48 = vld [vmem:[#allocation5 + $0x72c] ss:$16 sps:$4 sm:$0xff]   ;;  %v3616_v49 = vld [vmem:[#allocation5 + $0x720] ss:$16 sps:$4 sm:$0xff]  }
 0x105   :  { %1793 = vmatpush1.bf16.msra.mxu0 %v3524_v50  ;;  %1957 = vmatpush1.bf16.msra.mxu1 %v3527_v51  ;;  %v3619_v50 = vld [vmem:[#allocation5 + $0x728] ss:$16 sps:$4 sm:$0xff]   ;;  %v3624_v51 = vld [vmem:[#allocation5 + $0x744] ss:$16 sps:$4 sm:$0xff]  }
 0x106   :  { %1794 = vmatprep.subr.bf16.mxu0 %v3532_v52  ;;  %1958 = vmatprep.subr.bf16.mxu1 %v3535_v53  ;;  %v3627_v52 = vld [vmem:[#allocation5 + $0x74c] ss:$16 sps:$4 sm:$0xff]   ;;  %v3622_v53 = vld [vmem:[#allocation5 + $0x740] ss:$16 sps:$4 sm:$0xff]  }
 0x109   :  { %1795 = vmatpush1.bf16.msra.mxu0 %v3530_v54  ;;  %1959 = vmatpush1.bf16.msra.mxu1 %v3533_v55  ;;  %v3625_v54 = vld [vmem:[#allocation5 + $0x748] ss:$16 sps:$4 sm:$0xff]   ;;  %v3630_v55 = vld [vmem:[#allocation5 + $0x764] ss:$16 sps:$4 sm:$0xff]  }
 0x10a   :  { %1796 = vmatprep.subr.bf16.mxu0 %v3538_v56  ;;  %1960 = vmatprep.subr.bf16.mxu1 %v3541_v57  ;;  %v3633_v56 = vld [vmem:[#allocation5 + $0x76c] ss:$16 sps:$4 sm:$0xff]   ;;  %v3628_v57 = vld [vmem:[#allocation5 + $0x760] ss:$16 sps:$4 sm:$0xff]  }
 0x10d   :  { %1797 = vmatpush1.bf16.msra.mxu0 %v3536_v58  ;;  %1961 = vmatpush1.bf16.msra.mxu1 %v3539_v59  ;;  %v3631_v58 = vld [vmem:[#allocation5 + $0x768] ss:$16 sps:$4 sm:$0xff]   ;;  %v3636_v59 = vld [vmem:[#allocation5 + $0x784] ss:$16 sps:$4 sm:$0xff]  }
 0x10e   :  { %1798 = vmatprep.subr.bf16.mxu0 %v3544_v60  ;;  %1962 = vmatprep.subr.bf16.mxu1 %v3547_v61  ;;  %v3639_v60 = vld [vmem:[#allocation5 + $0x78c] ss:$16 sps:$4 sm:$0xff]   ;;  %v3634_v61 = vld [vmem:[#allocation5 + $0x780] ss:$16 sps:$4 sm:$0xff]  }
 0x111   :  { %1799 = vmatpush1.bf16.msra.mxu0 %v3542_v62  ;;  %1963 = vmatpush1.bf16.msra.mxu1 %v3545_v63  ;;  %v3637_v62 = vld [vmem:[#allocation5 + $0x788] ss:$16 sps:$4 sm:$0xff]   ;;  %v3642_v63 = vld [vmem:[#allocation5 + $0x7a4] ss:$16 sps:$4 sm:$0xff]  }
 0x112   :  { %1800 = vmatprep.subr.bf16.mxu0 %v3550_v0  ;;  %1964 = vmatprep.subr.bf16.mxu1 %v3553_v1  ;;  %v3645_v0 = vld [vmem:[#allocation5 + $0x7ac] ss:$16 sps:$4 sm:$0xff]   ;;  %v3640_v1 = vld [vmem:[#allocation5 + $0x7a0] ss:$16 sps:$4 sm:$0xff]  }
 0x115   :  { %1801 = vmatpush1.bf16.msra.mxu0 %v3548_v2  ;;  %1965 = vmatpush1.bf16.msra.mxu1 %v3551_v3  ;;  %v3643_v2 = vld [vmem:[#allocation5 + $0x7a8] ss:$16 sps:$4 sm:$0xff]   ;;  %v3648_v3 = vld [vmem:[#allocation5 + $0x7c4] ss:$16 sps:$4 sm:$0xff]  }
 0x116   :  { %1802 = vmatprep.subr.bf16.mxu0 %v3556_v4  ;;  %1966 = vmatprep.subr.bf16.mxu1 %v3559_v5  ;;  %v3651_v4 = vld [vmem:[#allocation5 + $0x7cc] ss:$16 sps:$4 sm:$0xff]   ;;  %v3646_v5 = vld [vmem:[#allocation5 + $0x7c0] ss:$16 sps:$4 sm:$0xff]  }
 0x119   :  { %1803 = vmatpush1.bf16.msra.mxu0 %v3554_v6  ;;  %1967 = vmatpush1.bf16.msra.mxu1 %v3557_v7  ;;  %v3649_v6 = vld [vmem:[#allocation5 + $0x7c8] ss:$16 sps:$4 sm:$0xff]   ;;  %v3654_v7 = vld [vmem:[#allocation5 + $0x7e4] ss:$16 sps:$4 sm:$0xff]  }
 0x11a   :  { %1813 = vmatprep.subr.bf16.mxu0 %v3564_v8  ;;  %1977 = vmatprep.subr.bf16.mxu1 %v3567_v9  ;;  %v3657_v8 = vld [vmem:[#allocation5 + $0x7ec] ss:$16 sps:$4 sm:$0xff]   ;;  %v3652_v9 = vld [vmem:[#allocation5 + $0x7e0] ss:$16 sps:$4 sm:$0xff]  }
 0x11c   :  { %1805 = vmatmul.mubr.bf16.vlgmr.msra.gmra.mrb[0].mxu0 %v2819_v14  ;;  %1969 = vmatmul.mubr.bf16.vlgmr.msra.gmra.mrb[0].mxu1 %v2819_v14  ;;  %v2821_v14 = vcombine.low %v4067_v13, %v4067_v13  ;;  %v3672_v13 = vld [vmem:[#allocation7 + $0x40] ss:$8 sps:$4 sm:$0xff]  }
 0x11d   :  { %1814 = vmatpush1.bf16.msra.mxu0 %v3562_v10  ;;  %1978 = vmatpush1.bf16.msra.mxu1 %v3565_v12  ;;  %v3655_v10 = vld [vmem:[#allocation5 + $0x7e8] ss:$16 sps:$4 sm:$0xff]   ;;  %v3662_v12 = vld [vmem:[#allocation7 + $0x4] ss:$8 sps:$4 sm:$0xff]  }
 0x11e   :  { %1815 = vmatprep.subr.bf16.mxu0 %v3570_v15  ;;  %1979 = vmatprep.subr.bf16.mxu1 %v3573_v16  ;;  %v3660_v15 = vld [vmem:[#allocation7] ss:$8 sps:$4 sm:$0xff]   ;;  %v3665_v16 = vld [vmem:[#allocation7 + $0x14] ss:$8 sps:$4 sm:$0xff]  }
 0x11f   :  { %1845 = vmatprep.mubr.bf16.mxu0 %v2822_v19  ;;  %2009 = vmatprep.mubr.bf16.mxu1 %v2822_v19  ;;  %v3666_v19 = vld [vmem:[#allocation7 + $0x20] ss:$8 sps:$4 sm:$0xff]  }
 0x121   :  { %1816 = vmatpush1.bf16.msra.mxu0 %v3568_v17  ;;  %1980 = vmatpush1.bf16.msra.mxu1 %v3571_v18  ;;  %v3663_v17 = vld [vmem:[#allocation7 + $0x10] ss:$8 sps:$4 sm:$0xff]   ;;  %v3668_v18 = vld [vmem:[#allocation7 + $0x24] ss:$8 sps:$4 sm:$0xff]  }
 0x122   :  { %1817 = vmatprep.subr.bf16.mxu0 %v3576_v20  ;;  %1981 = vmatprep.subr.bf16.mxu1 %v3579_v21  ;;  %v3671_v20 = vld [vmem:[#allocation7 + $0x34] ss:$8 sps:$4 sm:$0xff]   ;;  %v3669_v21 = vld [vmem:[#allocation7 + $0x30] ss:$8 sps:$4 sm:$0xff]  }
 0x125   :  { %1818 = vmatpush1.bf16.msra.mxu0 %v3574_v11  ;;  %1982 = vmatpush1.bf16.msra.mxu1 %v3577_v22  ;;  %v3674_v11 = vld [vmem:[#allocation7 + $0x44] ss:$8 sps:$4 sm:$0xff]   ;;  %v3677_v22 = vld [vmem:[#allocation7 + $0x54] ss:$8 sps:$4 sm:$0xff]  }
 0x126   :  { %1819 = vmatprep.subr.bf16.mxu0 %v3582_v23  ;;  %1983 = vmatprep.subr.bf16.mxu1 %v3585_v24  ;;  %v3675_v23 = vld [vmem:[#allocation7 + $0x50] ss:$8 sps:$4 sm:$0xff]   ;;  %v3680_v24 = vld [vmem:[#allocation7 + $0x64] ss:$8 sps:$4 sm:$0xff]  }
 0x129   :  { %1820 = vmatpush1.bf16.msra.mxu0 %v3580_v25  ;;  %1984 = vmatpush1.bf16.msra.mxu1 %v3583_v26  ;;  %v3678_v25 = vld [vmem:[#allocation7 + $0x60] ss:$8 sps:$4 sm:$0xff]   ;;  %v3683_v26 = vld [vmem:[#allocation7 + $0x74] ss:$8 sps:$4 sm:$0xff]  }
 0x12a   :  { %1821 = vmatprep.subr.bf16.mxu0 %v3588_v27  ;;  %1985 = vmatprep.subr.bf16.mxu1 %v3591_v28  ;;  %v3681_v27 = vld [vmem:[#allocation7 + $0x70] ss:$8 sps:$4 sm:$0xff]   ;;  %v3686_v28 = vld [vmem:[#allocation7 + $0x84] ss:$8 sps:$4 sm:$0xff]  }
 0x12d   :  { %1822 = vmatpush1.bf16.msra.mxu0 %v3586_v29  ;;  %1986 = vmatpush1.bf16.msra.mxu1 %v3589_v30  ;;  %v3684_v29 = vld [vmem:[#allocation7 + $0x80] ss:$8 sps:$4 sm:$0xff]   ;;  %v3689_v30 = vld [vmem:[#allocation7 + $0x94] ss:$8 sps:$4 sm:$0xff]  }
 0x12e   :  { %1823 = vmatprep.subr.bf16.mxu0 %v3594_v31  ;;  %1987 = vmatprep.subr.bf16.mxu1 %v3597_v32  ;;  %v3687_v31 = vld [vmem:[#allocation7 + $0x90] ss:$8 sps:$4 sm:$0xff]   ;;  %v3692_v32 = vld [vmem:[#allocation7 + $0xa4] ss:$8 sps:$4 sm:$0xff]  }
 0x131   :  { %1824 = vmatpush1.bf16.msra.mxu0 %v3592_v33  ;;  %1988 = vmatpush1.bf16.msra.mxu1 %v3595_v34  ;;  %v3690_v33 = vld [vmem:[#allocation7 + $0xa0] ss:$8 sps:$4 sm:$0xff]   ;;  %v3695_v34 = vld [vmem:[#allocation7 + $0xb4] ss:$8 sps:$4 sm:$0xff]  }
 0x132   :  { %1825 = vmatprep.subr.bf16.mxu0 %v3600_v35  ;;  %1989 = vmatprep.subr.bf16.mxu1 %v3603_v36  ;;  %v3693_v35 = vld [vmem:[#allocation7 + $0xb0] ss:$8 sps:$4 sm:$0xff]   ;;  %v3698_v36 = vld [vmem:[#allocation7 + $0xc4] ss:$8 sps:$4 sm:$0xff]  }
 0x135   :  { %1826 = vmatpush1.bf16.msra.mxu0 %v3598_v37  ;;  %1990 = vmatpush1.bf16.msra.mxu1 %v3601_v38  ;;  %v3696_v37 = vld [vmem:[#allocation7 + $0xc0] ss:$8 sps:$4 sm:$0xff]   ;;  %v3701_v38 = vld [vmem:[#allocation7 + $0xd4] ss:$8 sps:$4 sm:$0xff]  }
 0x136   :  { %1827 = vmatprep.subr.bf16.mxu0 %v3606_v39  ;;  %1991 = vmatprep.subr.bf16.mxu1 %v3609_v40  ;;  %v3699_v39 = vld [vmem:[#allocation7 + $0xd0] ss:$8 sps:$4 sm:$0xff]   ;;  %v3704_v40 = vld [vmem:[#allocation7 + $0xe4] ss:$8 sps:$4 sm:$0xff]  }
 0x139   :  { %1828 = vmatpush1.bf16.msra.mxu0 %v3604_v41  ;;  %1992 = vmatpush1.bf16.msra.mxu1 %v3607_v42  ;;  %v3702_v41 = vld [vmem:[#allocation7 + $0xe0] ss:$8 sps:$4 sm:$0xff]   ;;  %v3707_v42 = vld [vmem:[#allocation7 + $0xf4] ss:$8 sps:$4 sm:$0xff]  }
 0x13a   :  { %1829 = vmatprep.subr.bf16.mxu0 %v3612_v43  ;;  %1993 = vmatprep.subr.bf16.mxu1 %v3615_v44  ;;  %v3705_v43 = vld [vmem:[#allocation7 + $0xf0] ss:$8 sps:$4 sm:$0xff]   ;;  %v3710_v44 = vld [vmem:[#allocation7 + $0x104] ss:$8 sps:$4 sm:$0xff]  }
 0x13d   :  { %1830 = vmatpush1.bf16.msra.mxu0 %v3610_v45  ;;  %1994 = vmatpush1.bf16.msra.mxu1 %v3613_v46  ;;  %v3756_v45 = vld [vmem:[#allocation8 + $0x40] sm:$0xff]  }
 0x13e   :  { %1831 = vmatprep.subr.bf16.mxu0 %v3618_v47  ;;  %1995 = vmatprep.subr.bf16.mxu1 %v3621_v48  ;;  %v3757_v46 = vld [vmem:[#allocation8] sm:$0xff]   ;;  %v3758_v47 = vld [vmem:[#allocation8 + $0x48] sm:$0xff]  }
 0x13f   :  { %v3759_v48 = vld [vmem:[#allocation8 + $0x8] sm:$0xff]  }
 0x141   :  { %1832 = vmatpush1.bf16.msra.mxu0 %v3616_v49  ;;  %1996 = vmatpush1.bf16.msra.mxu1 %v3619_v50  ;;  %v3760_v49 = vld [vmem:[#allocation8 + $0x50] sm:$0xff]  }
 0x142   :  { %1833 = vmatprep.subr.bf16.mxu0 %v3624_v51  ;;  %1997 = vmatprep.subr.bf16.mxu1 %v3627_v52  ;;  %v3761_v50 = vld [vmem:[#allocation8 + $0x10] sm:$0xff]   ;;  %v3762_v51 = vld [vmem:[#allocation8 + $0x58] sm:$0xff]  }
 0x143   :  { %v3763_v52 = vld [vmem:[#allocation8 + $0x18] sm:$0xff]  }
 0x145   :  { %1834 = vmatpush1.bf16.msra.mxu0 %v3622_v53  ;;  %1998 = vmatpush1.bf16.msra.mxu1 %v3625_v54  ;;  %v3764_v53 = vld [vmem:[#allocation8 + $0x60] sm:$0xff]  }
 0x146   :  { %1835 = vmatprep.subr.bf16.mxu0 %v3630_v55  ;;  %1999 = vmatprep.subr.bf16.mxu1 %v3633_v56  ;;  %v3765_v54 = vld [vmem:[#allocation8 + $0x20] sm:$0xff]   ;;  %v3766_v55 = vld [vmem:[#allocation8 + $0x68] sm:$0xff]  }
 0x147   :  { %v3767_v56 = vld [vmem:[#allocation8 + $0x28] sm:$0xff]  }
 0x149   :  { %1836 = vmatpush1.bf16.msra.mxu0 %v3628_v57  ;;  %2000 = vmatpush1.bf16.msra.mxu1 %v3631_v58  ;;  %v362_v57 = vlaneseq }
 0x14a   :  { %1837 = vmatprep.subr.bf16.mxu0 %v3636_v59  ;;  %2001 = vmatprep.subr.bf16.mxu1 %v3639_v60  ;;  %v4081_v60 = vld [vmem:[%s4124_s2] sm:$0xf] }
 0x14b   :  { %v4075_v58 = vshrl.u32 %v362_v57, 7  ;;  %v3770_v57 = vld [vmem:[#allocation8 + $0x78] sm:$0xff]  }
 0x14d   :  { %1838 = vmatpush1.bf16.msra.mxu0 %v3634_v61  ;;  %2002 = vmatpush1.bf16.msra.mxu1 %v3637_v62  ;;  %v364_v59 = vsub.s32 0, %v4075_v58  ;;  %v368_v61 = vsub.s32 1, %v4075_v58  ;;  %v376_v62 = vsub.s32 3, %v4075_v58 }
 0x14e   :  { %1839 = vmatprep.subr.bf16.mxu0 %v3642_v63  ;;  %2003 = vmatprep.subr.bf16.mxu1 %v3645_v0 }
 0x14f   :  { %v365_v63 = vrot.slane %v4081_v60, %v364_v59  ;;  %v369_v0 = vrot.slane %v4081_v60, %v368_v61 }
 0x151   :  { %1840 = vmatpush1.bf16.msra.mxu0 %v3640_v1  ;;  %2004 = vmatpush1.bf16.msra.mxu1 %v3643_v2  ;;  %v377_v1 = vrot.slane %v4081_v60, %v376_v62  ;;  %v3931_v62 = vmov 0.0  }
 0x152   :  { %1841 = vmatprep.subr.bf16.mxu0 %v3648_v3  ;;  %2005 = vmatprep.subr.bf16.mxu1 %v3651_v4 }
 0x155   :  { %1842 = vmatpush1.bf16.msra.mxu0 %v3646_v5  ;;  %2006 = vmatpush1.bf16.msra.mxu1 %v3649_v6 }
 0x156   :  { %1843 = vmatprep.subr.bf16.mxu0 %v3654_v7  ;;  %2007 = vmatprep.subr.bf16.mxu1 %v3657_v8 }
 0x159   :  { %1844 = vmatpush1.bf16.msra.mxu0 %v3652_v9  ;;  %2008 = vmatpush1.bf16.msra.mxu1 %v3655_v10 }
 0x15a   :  { %2422 = vmatprep.subr.bf16.mxu0 %v3662_v12  ;;  %3169 = vmatprep.subr.bf16.mxu1 %v3756_v45  ;;  %v3749_v45 = vld [vmem:[#allocation7 + $0x1d4] ss:$8 sps:$4 sm:$0xff]  }
 0x15c   :  { %1846 = vmatmul.mubr.bf16.vlgmr.msra.gmra.mrb[0].mxu0 %v2821_v14  ;;  %2010 = vmatmul.mubr.bf16.vlgmr.msra.gmra.mrb[0].mxu1 %v2821_v14 }
 0x15d   :  { %2423 = vmatpush1.bf16.msra.mxu0 %v3660_v15  ;;  %3170 = vmatpush3.bf16.msra.mxu1 %v3757_v46  ;;  %v3747_v46 = vld [vmem:[#allocation7 + $0x1d0] ss:$8 sps:$4 sm:$0xff]  }
 0x15e   :  { %2424 = vmatprep.subr.bf16.mxu0 %v3665_v16  ;;  %3171 = vmatprep.subr.bf16.mxu1 %v3758_v47 }
 0x161   :  { %2425 = vmatpush1.bf16.msra.mxu0 %v3663_v17  ;;  %3172 = vmatpush3.bf16.msra.mxu1 %v3759_v48  ;;  %v3752_v48 = vld [vmem:[#allocation7 + $0x1e4] ss:$8 sps:$4 sm:$0xff]  }
 0x162   :  { %2426 = vmatprep.subr.bf16.mxu0 %v3668_v18  ;;  %3173 = vmatprep.subr.bf16.mxu1 %v3760_v49  ;;  %v3750_v49 = vld [vmem:[#allocation7 + $0x1e0] ss:$8 sps:$4 sm:$0xff]  }
 0x165   :  { %2427 = vmatpush1.bf16.msra.mxu0 %v3666_v19  ;;  %3174 = vmatpush3.bf16.msra.mxu1 %v3761_v50  ;;  %v3708_v19 = vld [vmem:[#allocation7 + $0x100] ss:$8 sps:$4 sm:$0xff]  }
 0x166   :  { %2428 = vmatprep.subr.bf16.mxu0 %v3671_v20  ;;  %3175 = vmatprep.subr.bf16.mxu1 %v3762_v51  ;;  %v3755_v51 = vld [vmem:[#allocation7 + $0x1f4] ss:$8 sps:$4 sm:$0xff]  }
 0x169   :  { %2429 = vmatpush1.bf16.msra.mxu0 %v3669_v21  ;;  %3176 = vmatpush3.bf16.msra.mxu1 %v3763_v52  ;;  %v3713_v21 = vld [vmem:[#allocation7 + $0x114] ss:$8 sps:$4 sm:$0xff]   ;;  %v3753_v52 = vld [vmem:[#allocation7 + $0x1f0] ss:$8 sps:$4 sm:$0xff]  }
 0x16a   :  { %2430 = vmatprep.subr.bf16.mxu0 %v3674_v11  ;;  %3177 = vmatprep.subr.bf16.mxu1 %v3764_v53 }
 0x16d   :  { %2431 = vmatpush1.bf16.msra.mxu0 %v3672_v13  ;;  %3178 = vmatpush3.bf16.msra.mxu1 %v3765_v54  ;;  %v3711_v13 = vld [vmem:[#allocation7 + $0x110] ss:$8 sps:$4 sm:$0xff]  }
 0x16e   :  { %2432 = vmatprep.subr.bf16.mxu0 %v3677_v22  ;;  %3179 = vmatprep.subr.bf16.mxu1 %v3766_v55  ;;  %v3716_v22 = vld [vmem:[#allocation7 + $0x124] ss:$8 sps:$4 sm:$0xff]   ;;  %v3768_v55 = vld [vmem:[#allocation8 + $0x70] sm:$0xff]  }
 0x171   :  { %2433 = vmatpush1.bf16.msra.mxu0 %v3675_v23  ;;  %3180 = vmatpush3.bf16.msra.mxu1 %v3767_v56  ;;  %v3714_v23 = vld [vmem:[#allocation7 + $0x120] ss:$8 sps:$4 sm:$0xff]   ;;  %v3769_v56 = vld [vmem:[#allocation8 + $0x30] sm:$0xff]  }
 0x172   :  { %2434 = vmatprep.subr.bf16.mxu0 %v3680_v24  ;;  %v3719_v24 = vld [vmem:[#allocation7 + $0x134] ss:$8 sps:$4 sm:$0xff]   ;;  %3181 = vmatprep.subr.bf16.mxu1 %v3768_v55 }
 0x175   :  { %2435 = vmatpush1.bf16.msra.mxu0 %v3678_v25  ;;  %v3717_v25 = vld [vmem:[#allocation7 + $0x130] ss:$8 sps:$4 sm:$0xff]   ;;  %3182 = vmatpush3.bf16.msra.mxu1 %v3769_v56 }
 0x176   :  { %2436 = vmatprep.subr.bf16.mxu0 %v3683_v26  ;;  %v3722_v26 = vld [vmem:[#allocation7 + $0x144] ss:$8 sps:$4 sm:$0xff]   ;;  %3183 = vmatprep.subr.bf16.mxu1 %v3770_v57 }
 0x179   :  { %2437 = vmatpush1.bf16.msra.mxu0 %v3681_v27  ;;  %v3720_v27 = vld [vmem:[#allocation7 + $0x140] ss:$8 sps:$4 sm:$0xff]  }
 0x17a   :  { %2438 = vmatprep.subr.bf16.mxu0 %v3686_v28  ;;  %v3725_v28 = vld [vmem:[#allocation7 + $0x154] ss:$8 sps:$4 sm:$0xff]  }
 0x17d   :  { %2439 = vmatpush1.bf16.msra.mxu0 %v3684_v29  ;;  %v3723_v29 = vld [vmem:[#allocation7 + $0x150] ss:$8 sps:$4 sm:$0xff]  }
 0x17e   :  { %2440 = vmatprep.subr.bf16.mxu0 %v3689_v30  ;;  %v3728_v30 = vld [vmem:[#allocation7 + $0x164] ss:$8 sps:$4 sm:$0xff]  }
 0x181   :  { %2441 = vmatpush1.bf16.msra.mxu0 %v3687_v31  ;;  %v3726_v31 = vld [vmem:[#allocation7 + $0x160] ss:$8 sps:$4 sm:$0xff]  }
 0x182   :  { %2442 = vmatprep.subr.bf16.mxu0 %v3692_v32  ;;  %v3731_v32 = vld [vmem:[#allocation7 + $0x174] ss:$8 sps:$4 sm:$0xff]  }
 0x185   :  { %2443 = vmatpush1.bf16.msra.mxu0 %v3690_v33  ;;  %v3729_v33 = vld [vmem:[#allocation7 + $0x170] ss:$8 sps:$4 sm:$0xff]  }
 0x186   :  { %2444 = vmatprep.subr.bf16.mxu0 %v3695_v34  ;;  %v3734_v34 = vld [vmem:[#allocation7 + $0x184] ss:$8 sps:$4 sm:$0xff]  }
 0x189   :  { %2445 = vmatpush1.bf16.msra.mxu0 %v3693_v35  ;;  %v3732_v35 = vld [vmem:[#allocation7 + $0x180] ss:$8 sps:$4 sm:$0xff]  }
 0x18a   :  { %2446 = vmatprep.subr.bf16.mxu0 %v3698_v36  ;;  %v3737_v36 = vld [vmem:[#allocation7 + $0x194] ss:$8 sps:$4 sm:$0xff]  }
 0x18d   :  { %2447 = vmatpush1.bf16.msra.mxu0 %v3696_v37  ;;  %v3735_v37 = vld [vmem:[#allocation7 + $0x190] ss:$8 sps:$4 sm:$0xff]  }
 0x18e   :  { %2448 = vmatprep.subr.bf16.mxu0 %v3701_v38  ;;  %v3740_v38 = vld [vmem:[#allocation7 + $0x1a4] ss:$8 sps:$4 sm:$0xff]  }
 0x191   :  { %2449 = vmatpush1.bf16.msra.mxu0 %v3699_v39  ;;  %v3738_v39 = vld [vmem:[#allocation7 + $0x1a0] ss:$8 sps:$4 sm:$0xff]  }
 0x192   :  { %2450 = vmatprep.subr.bf16.mxu0 %v3704_v40  ;;  %v3743_v40 = vld [vmem:[#allocation7 + $0x1b4] ss:$8 sps:$4 sm:$0xff]  }
 0x195   :  { %2451 = vmatpush1.bf16.msra.mxu0 %v3702_v41  ;;  %v3741_v41 = vld [vmem:[#allocation7 + $0x1b0] ss:$8 sps:$4 sm:$0xff]  }
 0x196   :  { %2452 = vmatprep.subr.bf16.mxu0 %v3707_v42  ;;  %v3746_v42 = vld [vmem:[#allocation7 + $0x1c4] ss:$8 sps:$4 sm:$0xff]  }
 0x199   :  { %2453 = vmatpush1.bf16.msra.mxu0 %v3705_v43  ;;  %v3744_v43 = vld [vmem:[#allocation7 + $0x1c0] ss:$8 sps:$4 sm:$0xff]  }
 0x19a   :  { %2463 = vmatprep.subr.bf16.mxu0 %v3710_v44  ;;  %v372_v44 = vsub.s32 2, %v4075_v58  ;;  %v3775_v58 = vld [vmem:[#allocation10 + $0x18] sm:$0xff]  }
 0x19c   :  { %v373_v47 = vrot.slane %v4081_v60, %v372_v44  ;;  %v3771_v60 = vld [vmem:[#allocation8 + $0x38] sm:$0xff]  }
 0x19d   :  { %3184 = vmatpush3.bf16.msra.mxu1 %v3771_v60 }
 0x19e   :  { %3200 = vmatprep.subr.bf16.mxu1 %v3931_v62 }
 0x22f   :  { %v1847_v2 = vpop.f32.mrb[0].mxu0  ;;  %v4092_v3 = vpop.f32.mrb[0].mxu1 }
 0x230   :  { %v3220_v4 = vadd.f32 %v1847_v2, %v365_v63  ;;  %v1849_v5 = vpop.f32.mrb[1].mxu0  ;;  %v2013_v6 = vpop.f32.mrb[1].mxu1  ;;  %v3222_v50 = vadd.f32 %v4092_v3, %v373_v47  ;;  %v2090_v63 = vld [vmem:[%s4126_s4] sm:$0x3] }
 0x231   :  { %v3221_v7 = vadd.f32 %v1849_v5, %v369_v0  ;;  %v3223_v8 = vadd.f32 %v2013_v6, %v377_v1  ;;  %v1851_v9 = vpop.f32.mrb[2].mxu0  ;;  %v2015_v10 = vpop.f32.mrb[2].mxu1  ;;  %v2095_v0 = vrot.slane %v2090_v63, %v364_v59  ;;  %v2099_v1 = vrot.slane %v2090_v63, %v368_v61  ;;  %v3774_v59 = vld [vmem:[#allocation10 + $0x10] sm:$0xff]   ;;  %v3776_v61 = vld [vmem:[#allocation10 + $0x20] sm:$0xff]  }
 0x232   :  { %v2018_v12 = vmax.f32 %v3220_v4, 0.0  ;;  %v1852_v14 = vpop.f32.mrb[3].mxu0  ;;  %v2016_v15 = vpop.f32.mrb[3].mxu1  ;;  %v2020_v53 = vmax.f32 %v3222_v50, 0.0 }
 0x233   :  { %v2019_v16 = vmax.f32 %v3221_v7, 0.0  ;;  %v2021_v17 = vmax.f32 %v3223_v8, 0.0  ;;  %v3773_v15 = vld [vmem:[#allocation10 + $0x8] sm:$0xff]  }
 0x234   :  { %v2022_v20 = vpack.c.bf16 %v2018_v12, %v2018_v12  ;;  %v2024_v54 = vpack.c.bf16 %v2020_v53, %v2020_v53  ;;  %v3772_v12 = vld [vmem:[#allocation10] sm:$0xff]  }
 0x235   :  { %v2023_v18 = vpack.c.bf16 %v2019_v16, %v2019_v16  ;;  %v2025_v11 = vpack.c.bf16 %v2021_v17, %v2021_v17  ;;  %v3777_v16 = vld [vmem:[#allocation10 + $0x28] sm:$0xff]   ;;  %v3778_v17 = vld [vmem:[#allocation10 + $0x30] sm:$0xff]  }
 0x237   :  { %2454 = vmatprep.mubr.bf16.mxu0 %v2023_v18  ;;  %v3779_v18 = vld [vmem:[#allocation10 + $0x38] sm:$0xff]  }
 0x238   :  { %2455 = vmatmul.mubr.bf16.vlgmr.msra.gmra.mrb[4].mxu0 %v2022_v20  ;;  %v3143_v20 = vld [vmem:[%s4128_s6] ss:$0 sm:$0xff]  ;;  %s3890_s6 = scalar_lea.vmem %s2805_s13, 64 }
 0x239   :  { %2464 = vmatpush1.bf16.msra.mxu0 %v3708_v19  ;;  %2495 = vmatprep.mubr.bf16.mxu0 %v2025_v11  ;;  %p3891_p12 = scmp.ne.s32.totalorder %s2805_s13, %s3890_s6  ;;  %p3896_p0 = scmp.lt.s32.totalorder %s3890_s6, %s3890_s6 }
 0x23a   :  { %2465 = vmatprep.subr.bf16.mxu0 %v3713_v21 }
 0x23b   :  { %p3897_p1 = por %p3896_p0, %p3895_p13 }
 0x23d   :  { %2466 = vmatpush1.bf16.msra.mxu0 %v3711_v13  ;;  %p3898_p2 = pnand %p3897_p1, %p3891_p12 }
 0x23e   :  { %2467 = vmatprep.subr.bf16.mxu0 %v3716_v22 }
 0x241   :  { %2468 = vmatpush1.bf16.msra.mxu0 %v3714_v23 }
 0x242   :  { %2469 = vmatprep.subr.bf16.mxu0 %v3719_v24 }
 0x245   :  { %2470 = vmatpush1.bf16.msra.mxu0 %v3717_v25 }
 0x246   :  { %2471 = vmatprep.subr.bf16.mxu0 %v3722_v26  ;;  %v3160_v26 = vld [vmem:[%s4130_s8] ss:$0 sm:$0xff] }
 0x249   :  { %2472 = vmatpush1.bf16.msra.mxu0 %v3720_v27 }
 0x24a   :  { %2473 = vmatprep.subr.bf16.mxu0 %v3725_v28 }
 0x24d   :  { %2474 = vmatpush1.bf16.msra.mxu0 %v3723_v29 }
 0x24e   :  { %2475 = vmatprep.subr.bf16.mxu0 %v3728_v30 }
 0x251   :  { %2476 = vmatpush1.bf16.msra.mxu0 %v3726_v31 }
 0x252   :  { %2477 = vmatprep.subr.bf16.mxu0 %v3731_v32 }
 0x255   :  { %2478 = vmatpush1.bf16.msra.mxu0 %v3729_v33 }
 0x256   :  { %2479 = vmatprep.subr.bf16.mxu0 %v3734_v34 }
 0x259   :  { %2480 = vmatpush1.bf16.msra.mxu0 %v3732_v35 }
 0x25a   :  { %2481 = vmatprep.subr.bf16.mxu0 %v3737_v36 }
 0x25d   :  { %2482 = vmatpush1.bf16.msra.mxu0 %v3735_v37 }
 0x25e   :  { %2483 = vmatprep.subr.bf16.mxu0 %v3740_v38 }
 0x261   :  { %2484 = vmatpush1.bf16.msra.mxu0 %v3738_v39 }
 0x262   :  { %2485 = vmatprep.subr.bf16.mxu0 %v3743_v40 }
 0x265   :  { %2486 = vmatpush1.bf16.msra.mxu0 %v3741_v41 }
 0x266   :  { %2487 = vmatprep.subr.bf16.mxu0 %v3746_v42 }
 0x269   :  { %2488 = vmatpush1.bf16.msra.mxu0 %v3744_v43 }
 0x26a   :  { %2489 = vmatprep.subr.bf16.mxu0 %v3749_v45 }
 0x26d   :  { %2490 = vmatpush1.bf16.msra.mxu0 %v3747_v46 }
 0x26e   :  { %2491 = vmatprep.subr.bf16.mxu0 %v3752_v48 }
 0x271   :  { %2492 = vmatpush1.bf16.msra.mxu0 %v3750_v49 }
 0x272   :  { %2493 = vmatprep.subr.bf16.mxu0 %v3755_v51 }
 0x275   :  { %2494 = vmatpush1.bf16.msra.mxu0 %v3753_v52 }
 0x278   :  { %2496 = vmatmul.mubr.bf16.vlgmr.msra.gmra.mrb[4].mxu0 %v2024_v54 }
 0x34b   :  { %v2497_v2 = vpop.f32.mrb[4].mxu0 }
 0x34c   :  { %v3224_v3 = vadd.f32 %v2497_v2, %v2095_v0  ;;  %v2499_v4 = vpop.f32.mrb[5].mxu0 }
 0x34d   :  { %v3225_v5 = vadd.f32 %v2499_v4, %v2099_v1  ;;  %v2501_v6 = vpop.f32.mrb[6].mxu0 }
 0x34e   :  { %v2504_v7 = vmax.f32 %v3224_v3, 0.0  ;;  %v2502_v8 = vpop.f32.mrb[7].mxu0 }
 0x34f   :  { %v2505_v9 = vmax.f32 %v3225_v5, 0.0 }
 0x350   :  { %v2506_v14 = vpack.c.bf16 %v2504_v7, %v2504_v7 }
 0x351   :  { %v2507_v10 = vpack.c.bf16 %v2505_v9, %v2505_v9 }
 0x353   :  { %2675 = vmatprep.mubr.bf16.mxu1 %v2507_v10 }
 0x354   :  { %2676 = vmatmul.mubr.bf16.vlgmr.msra.gmra.mrb[4].mxu1 %v2506_v14 }
 0x355   :  { %3201 = vmatpush3.bf16.msra.mxu1 %v3772_v12  ;;  %3216 = vmatprep.mubr.msk.bf16.mxu1 %vm3932_vm0, %v3931_v62 }
 0x356   :  { %3202 = vmatprep.subr.bf16.mxu1 %v3931_v62 }
 0x359   :  { %3203 = vmatpush3.bf16.msra.mxu1 %v3773_v15 }
 0x35a   :  { %3204 = vmatprep.subr.bf16.mxu1 %v3931_v62 }
 0x35d   :  { %3205 = vmatpush3.bf16.msra.mxu1 %v3774_v59 }
 0x35e   :  { %3206 = vmatprep.subr.bf16.mxu1 %v3931_v62 }
 0x361   :  { %3207 = vmatpush3.bf16.msra.mxu1 %v3775_v58 }
 0x362   :  { %3208 = vmatprep.subr.bf16.mxu1 %v3931_v62 }
 0x365   :  { %3209 = vmatpush3.bf16.msra.mxu1 %v3776_v61 }
 0x366   :  { %3210 = vmatprep.subr.bf16.mxu1 %v3931_v62 }
 0x369   :  { %3211 = vmatpush3.bf16.msra.mxu1 %v3777_v16 }
 0x36a   :  { %3212 = vmatprep.subr.bf16.mxu1 %v3931_v62 }
 0x36d   :  { %3213 = vmatpush3.bf16.msra.mxu1 %v3778_v17 }
 0x36e   :  { %3214 = vmatprep.subr.bf16.mxu1 %v3931_v62 }
 0x371   :  { %3215 = vmatpush3.bf16.msra.mxu1 %v3779_v18 }
 0x427   :  { %v3185_v19 = vpop.f32.mrb[4].mxu1 }
 0x428   :  { %v3186_v21 = vpop.f32.mrb[5].mxu1 }
 0x429   :  { %v3187_v11 = vadd.f32 %v3186_v21, %v3185_v19  ;;  %v3188_v13 = vpop.f32.mrb[6].mxu1 }
 0x42a   :  { %v3189_v22 = vpop.f32.mrb[7].mxu1 }
 0x42b   :  { %v2678_v23 = vadd.f32 %v3187_v11, %v3143_v20 }
 0x42d   :  { %v2683_v24 = vmax.f32 %v2678_v23, 0.0 }
 0x42f   :  { %v2684_v25 = vpack.c.bf16 %v2683_v24, %v2683_v24 }
 0x431   :  { %3217 = vmatmul.mubr.bf16.vlgmr.msra.gmra.mrb[8].mxu1 %v2684_v25 }
 0x504   :  { %v2790_v27 = vpop.f32.mrb[8].mxu1 }
 0x505   :  { %v2791_v28 = vadd.f32 %v3160_v26, %v2790_v27  ;;  %v3218_v29 = vpop.f32.mrb[9].mxu1 }
 0x506   :  { %v2793_v30 = vpop.f32.mrb[10].mxu1 }
 0x507   :  { %v2796_v31 = vpack.c.bf16 %v2791_v28, %v2791_v28  ;;  %v3219_v32 = vpop.f32.mrb[11].mxu1 }
 0x509   :  { %2797 = vst [vmem:[#allocation11] sm:$0xf] %v2796_v31 }
 0x50a   :  { %3901 = shalt.err (!%p3898_p2)
}
 0x50b   :  { %s3902_s8 = scalar_lea.hbm %s4131_s9, 64 }
 0x50c   :  { %p3903_p3 = scmp.ne.s32.totalorder %s4131_s9, %s3902_s8  ;;  %p3906_p4 = scmp.lt.u32.totalorder %s3902_s8, %s4131_s9 }
 0x50e   :  { %p3908_p5 = pnand %p3906_p4, %p3903_p3 }
 0x510   :  { %3911 = shalt.err (!%p3908_p5)
}
 0x511   :  { %2807 = dma.vmem_to_hbm [thread:$0]  %s2805_s13, 64, %s4131_s9, [#allocation4]  }
 0x512   :  { %3918 = dma.done.wait [#allocation4], 64  }
 0x513   :  { %3919 = vsyncadd [#allocation4], 4294967232 }
 0x514   :  { %2811 = vsyncpa [#allocation3], 1 }
 0x515   :  { %2812 = vsyncpa [#allocation6], 1 }
 0x516   :  { %2813 = vsyncpa [#allocation9], 1 }
 0x517   :  { %2814 = vsyncpa [#allocation4], 1 }

</bundles_post_ra>
